<compile_context>
chip_gen: v7x
topology: tpu7x:2x2x1
jax: 0.10.0
libtpu: 0.0.40
codegen_flags: <defaults>
</compile_context>

<pallas_src>
import math
import functools

import jax
import jax.numpy as jnp
from jax import lax
from jax.experimental import pallas as pl
from jax.experimental.pallas import tpu as pltpu


def _round_up(n, m):
    return ((n + m - 1) // m) * m


# ---------------------------------------------------------------------------
# Fused kernel: per-chunk input projection + sequential GRU recurrence.
# h_ref / y_ref are constant-index output blocks => VMEM-resident carries
# across the (sequential, "arbitrary") grid axis.
# ---------------------------------------------------------------------------
def _gru_fused_kernel(x_ref, wx_ref, bx_ref, wzr_ref, whh_ref,
                      h_ref, y_ref, xp_scr, *,
                      Tc, Bp, T, Hp, needs_mask):
    c = pl.program_id(0)

    @pl.when(c == 0)
    def _():
        h_ref[...] = jnp.zeros_like(h_ref)
        y_ref[...] = jnp.zeros_like(y_ref)

    # Fused input projection for the whole chunk: one lane-dense MXU GEMM
    # (Tc*Bp, D) @ (D, 3*Hp).  Result stays in VMEM (never touches HBM).
    xp_scr[...] = (
        jnp.dot(x_ref[...], wx_ref[...], preferred_element_type=jnp.float32)
        + bx_ref[...]
    )

    wzr = wzr_ref[...]          # (Hp, 2*Hp)   fused [W_zh | W_rh]
    whh = whh_ref[...]          # (Hp, Hp)

    def step(i, carry):
        h, y = carry
        row = pl.multiple_of(i * Bp, 8)              # sublane-aligned start
        xp_i = xp_scr[pl.ds(row, Bp), :]             # (Bp, 3*Hp)
        # All slice boundaries below are multiples of 128 lanes (Hp, 2*Hp).
        zr = jax.nn.sigmoid(
            jnp.dot(h, wzr, preferred_element_type=jnp.float32)
            + xp_i[:, : 2 * Hp])
        z = zr[:, :Hp]
        r = zr[:, Hp:]
        y_new = jnp.tanh(
            jnp.dot(r * h, whh, preferred_element_type=jnp.float32)
            + xp_i[:, 2 * Hp:])
        h_new = (1.0 - z) * h + z * y_new
        if needs_mask:          # static flag: only emitted when T % Tc != 0
            valid = (c * Tc + i) < T
            h_new = jnp.where(valid, h_new, h)
            y_new = jnp.where(valid, y_new, y)
        return h_new, y_new

    h_fin, y_fin = lax.fori_loop(0, Tc, step, (h_ref[...], y_ref[...]),
                                 unroll=True)
    # Single store per chunk (resident blocks; HBM writeback only at the end).
    h_ref[...] = h_fin
    y_ref[...] = y_fin


def mygru_forward(x, params, *, time_chunk=8):
    """x: (B, T, D) float32.  Returns (h_T, y_T), each (B, H)."""
    B, T, D = x.shape
    H = params["b_h"].shape[0]

    if T == 0:  # empty sequence: reference semantics -> zero state
        z = jnp.zeros((B, H), jnp.float32)
        return z, z

    # Padding: batch to sublane multiple (8), time to a multiple of Tc,
    # hidden to a lane multiple (128) so all gate slices are lane-aligned.
    Bp = _round_up(B, 8)
    Tc = min(time_chunk, T)
    Tp = _round_up(T, Tc)
    Hp = _round_up(H, 128)
    n_chunks = Tp // Tc

    # Time-major padded x (single small XLA pass).
    # TODO(synk): at large scale, read x natively (B,T,D) or fold this
    # transpose/pad into the producer to avoid the extra HBM pass.
    x_tm = jnp.transpose(x, (1, 0, 2)).astype(jnp.float32)        # (T, B, D)
    x_p = jnp.pad(x_tm, ((0, Tp - T), (0, Bp - B), (0, 0)))
    x_flat = x_p.reshape(Tp * Bp, D)

    # ---- pack + pad weights -------------------------------------------------
    def split(w):               # (H+D, H) -> hidden part (H,H), input part (D,H)
        return w[:H, :], w[H:, :]

    wzh, wzx = split(params["W_z"])
    wrh, wrx = split(params["W_r"])
    whh, whx = split(params["W_h"])

    def pad_cols(w):            # (K, H) -> (K, Hp), zero-padded gate columns
        return jnp.pad(w, ((0, 0), (0, Hp - H)))

    def pad_rows(w):            # (H, N) -> (Hp, N), zero-padded hidden rows
        return jnp.pad(w, ((0, Hp - H), (0, 0)))

    def pad_b(b):               # (H,) -> (Hp,)
        return jnp.pad(b, (0, Hp - H))

    w_x = jnp.concatenate([pad_cols(wzx), pad_cols(wrx), pad_cols(whx)],
                          axis=1)                                  # (D, 3Hp)
    b_x = jnp.concatenate([pad_b(params["b_z"]), pad_b(params["b_r"]),
                           pad_b(params["b_h"])]).reshape(1, 3 * Hp)
    w_zr = jnp.concatenate([pad_rows(pad_cols(wzh)),
                            pad_rows(pad_cols(wrh))], axis=1)      # (Hp, 2Hp)
    w_hh = pad_rows(pad_cols(whh))                                 # (Hp, Hp)

    # ---- VMEM budget (f32, with lane padding), double-buffered inputs ------
    est = 4 * (
        2 * Tc * Bp * max(D, 128)            # x chunk (double-buffered)
        + 2 * (D * 3 * Hp + 8 * 3 * Hp)      # w_x, b_x
        + 2 * (Hp * 2 * Hp + Hp * Hp)        # w_zr, w_hh
        + Tc * Bp * 3 * Hp                   # xp scratch
        + 2 * Bp * Hp                        # h, y resident outputs
    )
    vmem_limit = min(64 * 1024 * 1024, max(32 * 1024 * 1024, 2 * est))

    kernel = functools.partial(_gru_fused_kernel, Tc=Tc, Bp=Bp, T=T, Hp=Hp,
                               needs_mask=(Tp != T))

    h_t, y_t = pl.pallas_call(
        kernel,
        out_shape=(jax.ShapeDtypeStruct((Bp, Hp), jnp.float32),
                   jax.ShapeDtypeStruct((Bp, Hp), jnp.float32)),
        grid_spec=pltpu.PrefetchScalarGridSpec(
            num_scalar_prefetch=0,
            grid=(n_chunks,),
            in_specs=[
                pl.BlockSpec((Tc * Bp, D), lambda c: (c, 0)),     # x chunk
                pl.BlockSpec((D, 3 * Hp), lambda c: (0, 0)),      # [Wzx|Wrx|Whx]
                pl.BlockSpec((1, 3 * Hp), lambda c: (0, 0)),      # [bz|br|bh]
                pl.BlockSpec((Hp, 2 * Hp), lambda c: (0, 0)),     # [Wzh|Wrh]
                pl.BlockSpec((Hp, Hp), lambda c: (0, 0)),         # Whh
            ],
            out_specs=[
                pl.BlockSpec((Bp, Hp), lambda c: (0, 0)),   # h (resident carry)
                pl.BlockSpec((Bp, Hp), lambda c: (0, 0)),   # y (resident carry)
            ],
            scratch_shapes=[pltpu.VMEM((Tc * Bp, 3 * Hp), jnp.float32)],
        ),
        compiler_params=pltpu.CompilerParams(
            dimension_semantics=("arbitrary",),   # time chunks are sequential
            vmem_limit_bytes=int(vmem_limit),
        ),
    )(x_flat, w_x, b_x, w_zr, w_hh)

    return h_t[:B, :H], y_t[:B, :H]


def mygru_reference(x, params):
    """Pure-JAX reference mirroring the PyTorch forward."""
    B, T, D = x.shape
    H = params["b_h"].shape[0]
    h = jnp.zeros((B, H), jnp.float32)
    y = jnp.zeros((B, H), jnp.float32)
    for t in range(T):
        x_t = x[:, t, :]
        cat = jnp.concatenate([h, x_t], axis=1)
        z = jax.nn.sigmoid(cat @ params["W_z"] + params["b_z"])
        r = jax.nn.sigmoid(cat @ params["W_r"] + params["b_r"])
        cat2 = jnp.concatenate([r * h, x_t], axis=1)
        y = jnp.tanh(cat2 @ params["W_h"] + params["b_h"])
        h = (1.0 - z) * h + z * y
    return h, y


def init_params(key, input_size, hidden_size):
    stdv = 1.0 / math.sqrt(hidden_size)
    ks = jax.random.split(key, 6)
    u = functools.partial(jax.random.uniform, minval=-stdv, maxval=stdv,
                          dtype=jnp.float32)
    cat_dim = hidden_size + input_size
    return {
        "W_r": u(ks[0], (cat_dim, hidden_size)),
        "b_r": u(ks[1], (hidden_size,)),
        "W_z": u(ks[2], (cat_dim, hidden_size)),
        "b_z": u(ks[3], (hidden_size,)),
        "W_h": u(ks[4], (cat_dim, hidden_size)),
        "b_h": u(ks[5], (hidden_size,)),
    }


if __name__ == "__main__":
    B, T, D, H = 2, 8, 16, 32
    key = jax.random.PRNGKey(0)
    k_x, k_p = jax.random.split(key)
    x = jax.random.normal(k_x, (B, T, D), dtype=jnp.float32)
    params = init_params(k_p, D, H)

    h_t, y_t = mygru_forward(x, params)
    jax.block_until_ready((h_t, y_t))

    h_ref, y_ref = mygru_reference(x, params)
    assert jnp.allclose(h_t, h_ref, atol=1e-5, rtol=1e-5)
    assert jnp.allclose(y_t, y_ref, atol=1e-5, rtol=1e-5)
    print("KERNEL_OK")
</pallas_src>

<mosaic_0001>
module attributes {stable_mosaic.version = 11 : i64} {
  func.func @_gru_fused_kernel(%arg0: i32, %arg1: memref<64x16xf32, #tpu.memory_space<vmem>>, %arg2: memref<16x384xf32, #tpu.memory_space<vmem>>, %arg3: memref<1x384xf32, #tpu.memory_space<vmem>>, %arg4: memref<128x256xf32, #tpu.memory_space<vmem>>, %arg5: memref<128x128xf32, #tpu.memory_space<vmem>>, %arg6: memref<8x128xf32, #tpu.memory_space<vmem>>, %arg7: memref<8x128xf32, #tpu.memory_space<vmem>>, %arg8: memref<64x384xf32, #tpu.memory_space<vmem>>) attributes {dimension_semantics = [#tpu.dimension_semantics<arbitrary>], iteration_bounds = array<i64: 1>, scalar_prefetch = 0 : i64, scratch_operands = 1 : i64, tpu.core_type = #tpu.core_type<tc>, window_params = [{transform_indices = @transform_0, window_bounds = array<i64: 64, 16>}, {pipeline_mode = #tpu.pipeline_mode<synchronous>, transform_indices = @transform_1, window_bounds = array<i64: 16, 384>}, {pipeline_mode = #tpu.pipeline_mode<synchronous>, transform_indices = @transform_2, window_bounds = array<i64: 1, 384>}, {pipeline_mode = #tpu.pipeline_mode<synchronous>, transform_indices = @transform_3, window_bounds = array<i64: 128, 256>}, {pipeline_mode = #tpu.pipeline_mode<synchronous>, transform_indices = @transform_4, window_bounds = array<i64: 128, 128>}, {pipeline_mode = #tpu.pipeline_mode<synchronous>, transform_indices = @transform_5, window_bounds = array<i64: 8, 128>}, {pipeline_mode = #tpu.pipeline_mode<synchronous>, transform_indices = @transform_6, window_bounds = array<i64: 8, 128>}]} {
    %c0_i32 = arith.constant 0 : i32
    %0 = arith.cmpi eq, %arg0, %c0_i32 : i32
    %1 = arith.extui %0 : i1 to i32
    %c0_i32_0 = arith.constant 0 : i32
    %2 = arith.cmpi ne, %1, %c0_i32_0 : i32
    scf.if %2 {
      %cst_69 = arith.constant 0.000000e+00 : f32
      %208 = vector.broadcast %cst_69 : f32 to vector<8x128xf32>
      %c0_70 = arith.constant 0 : index
      %c0_71 = arith.constant 0 : index
      %209 = vector.load %arg6[%c0_70, %c0_71] : memref<8x128xf32, #tpu.memory_space<vmem>>, vector<8x128xf32>
      tpu.vector_store %arg6[%c0_70, %c0_71], %208 {strides = array<i32>} : memref<8x128xf32, #tpu.memory_space<vmem>>, vector<8x128xf32>,
      %cst_72 = arith.constant 0.000000e+00 : f32
      %210 = vector.broadcast %cst_72 : f32 to vector<8x128xf32>
      %c0_73 = arith.constant 0 : index
      %c0_74 = arith.constant 0 : index
      %211 = vector.load %arg7[%c0_73, %c0_74] : memref<8x128xf32, #tpu.memory_space<vmem>>, vector<8x128xf32>
      tpu.vector_store %arg7[%c0_73, %c0_74], %210 {strides = array<i32>} : memref<8x128xf32, #tpu.memory_space<vmem>>, vector<8x128xf32>,
    } else {
    }
    %c0 = arith.constant 0 : index
    %c0_1 = arith.constant 0 : index
    %3 = vector.load %arg1[%c0, %c0_1] : memref<64x16xf32, #tpu.memory_space<vmem>>, vector<64x16xf32>
    %c0_2 = arith.constant 0 : index
    %c0_3 = arith.constant 0 : index
    %4 = vector.load %arg2[%c0_2, %c0_3] : memref<16x384xf32, #tpu.memory_space<vmem>>, vector<16x384xf32>
    %cst = arith.constant dense<0.000000e+00> : vector<64x384xf32>
    %5 = tpu.matmul %3, %4, %cst {dimension_numbers = #tpu.dot_dimension_numbers<[1], [0], [0], [1], [0, 0, 1, 1], [], []>} : vector<64x16xf32>, vector<16x384xf32>, vector<64x384xf32> -> vector<64x384xf32>
    %c0_4 = arith.constant 0 : index
    %c0_5 = arith.constant 0 : index
    %6 = vector.load %arg3[%c0_4, %c0_5] : memref<1x384xf32, #tpu.memory_space<vmem>>, vector<1x384xf32>
    %7 = vector.broadcast %6 : vector<1x384xf32> to vector<64x384xf32>
    %8 = arith.addf %5, %7 : vector<64x384xf32>
    %c0_6 = arith.constant 0 : index
    %c0_7 = arith.constant 0 : index
    %9 = vector.load %arg8[%c0_6, %c0_7] : memref<64x384xf32, #tpu.memory_space<vmem>>, vector<64x384xf32>
    tpu.vector_store %arg8[%c0_6, %c0_7], %8 {strides = array<i32>} : memref<64x384xf32, #tpu.memory_space<vmem>>, vector<64x384xf32>,
    %c0_8 = arith.constant 0 : index
    %c0_9 = arith.constant 0 : index
    %10 = vector.load %arg4[%c0_8, %c0_9] : memref<128x256xf32, #tpu.memory_space<vmem>>, vector<128x256xf32>
    %c0_10 = arith.constant 0 : index
    %c0_11 = arith.constant 0 : index
    %11 = vector.load %arg5[%c0_10, %c0_11] : memref<128x128xf32, #tpu.memory_space<vmem>>, vector<128x128xf32>
    %c0_12 = arith.constant 0 : index
    %c0_13 = arith.constant 0 : index
    %12 = vector.load %arg6[%c0_12, %c0_13] : memref<8x128xf32, #tpu.memory_space<vmem>>, vector<8x128xf32>
    %c0_14 = arith.constant 0 : index
    %c0_15 = arith.constant 0 : index
    %13 = vector.load %arg7[%c0_14, %c0_15] : memref<8x128xf32, #tpu.memory_space<vmem>>, vector<8x128xf32>
    %c0_i32_16 = arith.constant 0 : i32
    %c8_i32 = arith.constant 8 : i32
    %14 = arith.muli %c0_i32_16, %c8_i32 : i32
    %15 = tpu.assume_multiple %14, 8 : i32
    %16 = arith.index_cast %15 : i32 to index
    %c0_17 = arith.constant 0 : index
    %17 = vector.load %arg8[%16, %c0_17] : memref<64x384xf32, #tpu.memory_space<vmem>>, vector<8x384xf32>
    %cst_18 = arith.constant dense<0.000000e+00> : vector<8x256xf32>
    %18 = tpu.matmul %12, %10, %cst_18 {dimension_numbers = #tpu.dot_dimension_numbers<[1], [0], [0], [1], [0, 0, 1, 1], [], []>} : vector<8x128xf32>, vector<128x256xf32>, vector<8x256xf32> -> vector<8x256xf32>
    %19 = vector.extract_strided_slice %17 {offsets = [0, 0], sizes = [8, 256], strides = [1, 1]} : vector<8x384xf32> to vector<8x256xf32>
    %20 = arith.addf %18, %19 : vector<8x256xf32>
    %21 = arith.negf %20 : vector<8x256xf32>
    %22 = math.exp %21 : vector<8x256xf32>
    %cst_19 = arith.constant 1.000000e+00 : f32
    %23 = vector.broadcast %cst_19 : f32 to vector<8x256xf32>
    %24 = arith.addf %23, %22 : vector<8x256xf32>
    %25 = arith.divf %23, %24 : vector<8x256xf32>
    %26 = vector.extract_strided_slice %25 {offsets = [0, 0], sizes = [8, 128], strides = [1, 1]} : vector<8x256xf32> to vector<8x128xf32>
    %27 = vector.extract_strided_slice %25 {offsets = [0, 128], sizes = [8, 128], strides = [1, 1]} : vector<8x256xf32> to vector<8x128xf32>
    %28 = arith.mulf %27, %12 : vector<8x128xf32>
    %cst_20 = arith.constant dense<0.000000e+00> : vector<8x128xf32>
    %29 = tpu.matmul %28, %11, %cst_20 {dimension_numbers = #tpu.dot_dimension_numbers<[1], [0], [0], [1], [0, 0, 1, 1], [], []>} : vector<8x128xf32>, vector<128x128xf32>, vector<8x128xf32> -> vector<8x128xf32>
    %30 = vector.extract_strided_slice %17 {offsets = [0, 256], sizes = [8, 128], strides = [1, 1]} : vector<8x384xf32> to vector<8x128xf32>
    %31 = arith.addf %29, %30 : vector<8x128xf32>
    %32 = math.tanh %31 : vector<8x128xf32>
    %cst_21 = arith.constant 1.000000e+00 : f32
    %33 = vector.broadcast %cst_21 : f32 to vector<8x128xf32>
    %34 = arith.subf %33, %26 : vector<8x128xf32>
    %35 = arith.mulf %34, %12 : vector<8x128xf32>
    %36 = arith.mulf %26, %32 : vector<8x128xf32>
    %37 = arith.addf %35, %36 : vector<8x128xf32>
    %c1_i32 = arith.constant 1 : i32
    %c8_i32_22 = arith.constant 8 : i32
    %38 = arith.muli %c1_i32, %c8_i32_22 : i32
    %39 = tpu.assume_multiple %38, 8 : i32
    %40 = arith.index_cast %39 : i32 to index
    %c0_23 = arith.constant 0 : index
    %41 = vector.load %arg8[%40, %c0_23] : memref<64x384xf32, #tpu.memory_space<vmem>>, vector<8x384xf32>
    %cst_24 = arith.constant dense<0.000000e+00> : vector<8x256xf32>
    %42 = tpu.matmul %37, %10, %cst_24 {dimension_numbers = #tpu.dot_dimension_numbers<[1], [0], [0], [1], [0, 0, 1, 1], [], []>} : vector<8x128xf32>, vector<128x256xf32>, vector<8x256xf32> -> vector<8x256xf32>
    %43 = vector.extract_strided_slice %41 {offsets = [0, 0], sizes = [8, 256], strides = [1, 1]} : vector<8x384xf32> to vector<8x256xf32>
    %44 = arith.addf %42, %43 : vector<8x256xf32>
    %45 = arith.negf %44 : vector<8x256xf32>
    %46 = math.exp %45 : vector<8x256xf32>
    %cst_25 = arith.constant 1.000000e+00 : f32
    %47 = vector.broadcast %cst_25 : f32 to vector<8x256xf32>
    %48 = arith.addf %47, %46 : vector<8x256xf32>
    %49 = arith.divf %47, %48 : vector<8x256xf32>
    %50 = vector.extract_strided_slice %49 {offsets = [0, 0], sizes = [8, 128], strides = [1, 1]} : vector<8x256xf32> to vector<8x128xf32>
    %51 = vector.extract_strided_slice %49 {offsets = [0, 128], sizes = [8, 128], strides = [1, 1]} : vector<8x256xf32> to vector<8x128xf32>
    %52 = arith.mulf %51, %37 : vector<8x128xf32>
    %cst_26 = arith.constant dense<0.000000e+00> : vector<8x128xf32>
    %53 = tpu.matmul %52, %11, %cst_26 {dimension_numbers = #tpu.dot_dimension_numbers<[1], [0], [0], [1], [0, 0, 1, 1], [], []>} : vector<8x128xf32>, vector<128x128xf32>, vector<8x128xf32> -> vector<8x128xf32>
    %54 = vector.extract_strided_slice %41 {offsets = [0, 256], sizes = [8, 128], strides = [1, 1]} : vector<8x384xf32> to vector<8x128xf32>
    %55 = arith.addf %53, %54 : vector<8x128xf32>
    %56 = math.tanh %55 : vector<8x128xf32>
    %cst_27 = arith.constant 1.000000e+00 : f32
    %57 = vector.broadcast %cst_27 : f32 to vector<8x128xf32>
    %58 = arith.subf %57, %50 : vector<8x128xf32>
    %59 = arith.mulf %58, %37 : vector<8x128xf32>
    %60 = arith.mulf %50, %56 : vector<8x128xf32>
    %61 = arith.addf %59, %60 : vector<8x128xf32>
    %c2_i32 = arith.constant 2 : i32
    %c8_i32_28 = arith.constant 8 : i32
    %62 = arith.muli %c2_i32, %c8_i32_28 : i32
    %63 = tpu.assume_multiple %62, 8 : i32
    %64 = arith.index_cast %63 : i32 to index
    %c0_29 = arith.constant 0 : index
    %65 = vector.load %arg8[%64, %c0_29] : memref<64x384xf32, #tpu.memory_space<vmem>>, vector<8x384xf32>
    %cst_30 = arith.constant dense<0.000000e+00> : vector<8x256xf32>
    %66 = tpu.matmul %61, %10, %cst_30 {dimension_numbers = #tpu.dot_dimension_numbers<[1], [0], [0], [1], [0, 0, 1, 1], [], []>} : vector<8x128xf32>, vector<128x256xf32>, vector<8x256xf32> -> vector<8x256xf32>
    %67 = vector.extract_strided_slice %65 {offsets = [0, 0], sizes = [8, 256], strides = [1, 1]} : vector<8x384xf32> to vector<8x256xf32>
    %68 = arith.addf %66, %67 : vector<8x256xf32>
    %69 = arith.negf %68 : vector<8x256xf32>
    %70 = math.exp %69 : vector<8x256xf32>
    %cst_31 = arith.constant 1.000000e+00 : f32
    %71 = vector.broadcast %cst_31 : f32 to vector<8x256xf32>
    %72 = arith.addf %71, %70 : vector<8x256xf32>
    %73 = arith.divf %71, %72 : vector<8x256xf32>
    %74 = vector.extract_strided_slice %73 {offsets = [0, 0], sizes = [8, 128], strides = [1, 1]} : vector<8x256xf32> to vector<8x128xf32>
    %75 = vector.extract_strided_slice %73 {offsets = [0, 128], sizes = [8, 128], strides = [1, 1]} : vector<8x256xf32> to vector<8x128xf32>
    %76 = arith.mulf %75, %61 : vector<8x128xf32>
    %cst_32 = arith.constant dense<0.000000e+00> : vector<8x128xf32>
    %77 = tpu.matmul %76, %11, %cst_32 {dimension_numbers = #tpu.dot_dimension_numbers<[1], [0], [0], [1], [0, 0, 1, 1], [], []>} : vector<8x128xf32>, vector<128x128xf32>, vector<8x128xf32> -> vector<8x128xf32>
    %78 = vector.extract_strided_slice %65 {offsets = [0, 256], sizes = [8, 128], strides = [1, 1]} : vector<8x384xf32> to vector<8x128xf32>
    %79 = arith.addf %77, %78 : vector<8x128xf32>
    %80 = math.tanh %79 : vector<8x128xf32>
    %cst_33 = arith.constant 1.000000e+00 : f32
    %81 = vector.broadcast %cst_33 : f32 to vector<8x128xf32>
    %82 = arith.subf %81, %74 : vector<8x128xf32>
    %83 = arith.mulf %82, %61 : vector<8x128xf32>
    %84 = arith.mulf %74, %80 : vector<8x128xf32>
    %85 = arith.addf %83, %84 : vector<8x128xf32>
    %c3_i32 = arith.constant 3 : i32
    %c8_i32_34 = arith.constant 8 : i32
    %86 = arith.muli %c3_i32, %c8_i32_34 : i32
    %87 = tpu.assume_multiple %86, 8 : i32
    %88 = arith.index_cast %87 : i32 to index
    %c0_35 = arith.constant 0 : index
    %89 = vector.load %arg8[%88, %c0_35] : memref<64x384xf32, #tpu.memory_space<vmem>>, vector<8x384xf32>
    %cst_36 = arith.constant dense<0.000000e+00> : vector<8x256xf32>
    %90 = tpu.matmul %85, %10, %cst_36 {dimension_numbers = #tpu.dot_dimension_numbers<[1], [0], [0], [1], [0, 0, 1, 1], [], []>} : vector<8x128xf32>, vector<128x256xf32>, vector<8x256xf32> -> vector<8x256xf32>
    %91 = vector.extract_strided_slice %89 {offsets = [0, 0], sizes = [8, 256], strides = [1, 1]} : vector<8x384xf32> to vector<8x256xf32>
    %92 = arith.addf %90, %91 : vector<8x256xf32>
    %93 = arith.negf %92 : vector<8x256xf32>
    %94 = math.exp %93 : vector<8x256xf32>
    %cst_37 = arith.constant 1.000000e+00 : f32
    %95 = vector.broadcast %cst_37 : f32 to vector<8x256xf32>
    %96 = arith.addf %95, %94 : vector<8x256xf32>
    %97 = arith.divf %95, %96 : vector<8x256xf32>
    %98 = vector.extract_strided_slice %97 {offsets = [0, 0], sizes = [8, 128], strides = [1, 1]} : vector<8x256xf32> to vector<8x128xf32>
    %99 = vector.extract_strided_slice %97 {offsets = [0, 128], sizes = [8, 128], strides = [1, 1]} : vector<8x256xf32> to vector<8x128xf32>
    %100 = arith.mulf %99, %85 : vector<8x128xf32>
    %cst_38 = arith.constant dense<0.000000e+00> : vector<8x128xf32>
    %101 = tpu.matmul %100, %11, %cst_38 {dimension_numbers = #tpu.dot_dimension_numbers<[1], [0], [0], [1], [0, 0, 1, 1], [], []>} : vector<8x128xf32>, vector<128x128xf32>, vector<8x128xf32> -> vector<8x128xf32>
    %102 = vector.extract_strided_slice %89 {offsets = [0, 256], sizes = [8, 128], strides = [1, 1]} : vector<8x384xf32> to vector<8x128xf32>
    %103 = arith.addf %101, %102 : vector<8x128xf32>
    %104 = math.tanh %103 : vector<8x128xf32>
    %cst_39 = arith.constant 1.000000e+00 : f32
    %105 = vector.broadcast %cst_39 : f32 to vector<8x128xf32>
    %106 = arith.subf %105, %98 : vector<8x128xf32>
    %107 = arith.mulf %106, %85 : vector<8x128xf32>
    %108 = arith.mulf %98, %104 : vector<8x128xf32>
    %109 = arith.addf %107, %108 : vector<8x128xf32>
    %c4_i32 = arith.constant 4 : i32
    %c8_i32_40 = arith.constant 8 : i32
    %110 = arith.muli %c4_i32, %c8_i32_40 : i32
    %111 = tpu.assume_multiple %110, 8 : i32
    %112 = arith.index_cast %111 : i32 to index
    %c0_41 = arith.constant 0 : index
    %113 = vector.load %arg8[%112, %c0_41] : memref<64x384xf32, #tpu.memory_space<vmem>>, vector<8x384xf32>
    %cst_42 = arith.constant dense<0.000000e+00> : vector<8x256xf32>
    %114 = tpu.matmul %109, %10, %cst_42 {dimension_numbers = #tpu.dot_dimension_numbers<[1], [0], [0], [1], [0, 0, 1, 1], [], []>} : vector<8x128xf32>, vector<128x256xf32>, vector<8x256xf32> -> vector<8x256xf32>
    %115 = vector.extract_strided_slice %113 {offsets = [0, 0], sizes = [8, 256], strides = [1, 1]} : vector<8x384xf32> to vector<8x256xf32>
    %116 = arith.addf %114, %115 : vector<8x256xf32>
    %117 = arith.negf %116 : vector<8x256xf32>
    %118 = math.exp %117 : vector<8x256xf32>
    %cst_43 = arith.constant 1.000000e+00 : f32
    %119 = vector.broadcast %cst_43 : f32 to vector<8x256xf32>
    %120 = arith.addf %119, %118 : vector<8x256xf32>
    %121 = arith.divf %119, %120 : vector<8x256xf32>
    %122 = vector.extract_strided_slice %121 {offsets = [0, 0], sizes = [8, 128], strides = [1, 1]} : vector<8x256xf32> to vector<8x128xf32>
    %123 = vector.extract_strided_slice %121 {offsets = [0, 128], sizes = [8, 128], strides = [1, 1]} : vector<8x256xf32> to vector<8x128xf32>
    %124 = arith.mulf %123, %109 : vector<8x128xf32>
    %cst_44 = arith.constant dense<0.000000e+00> : vector<8x128xf32>
    %125 = tpu.matmul %124, %11, %cst_44 {dimension_numbers = #tpu.dot_dimension_numbers<[1], [0], [0], [1], [0, 0, 1, 1], [], []>} : vector<8x128xf32>, vector<128x128xf32>, vector<8x128xf32> -> vector<8x128xf32>
    %126 = vector.extract_strided_slice %113 {offsets = [0, 256], sizes = [8, 128], strides = [1, 1]} : vector<8x384xf32> to vector<8x128xf32>
    %127 = arith.addf %125, %126 : vector<8x128xf32>
    %128 = math.tanh %127 : vector<8x128xf32>
    %cst_45 = arith.constant 1.000000e+00 : f32
    %129 = vector.broadcast %cst_45 : f32 to vector<8x128xf32>
    %130 = arith.subf %129, %122 : vector<8x128xf32>
    %131 = arith.mulf %130, %109 : vector<8x128xf32>
    %132 = arith.mulf %122, %128 : vector<8x128xf32>
    %133 = arith.addf %131, %132 : vector<8x128xf32>
    %c5_i32 = arith.constant 5 : i32
    %c8_i32_46 = arith.constant 8 : i32
    %134 = arith.muli %c5_i32, %c8_i32_46 : i32
    %135 = tpu.assume_multiple %134, 8 : i32
    %136 = arith.index_cast %135 : i32 to index
    %c0_47 = arith.constant 0 : index
    %137 = vector.load %arg8[%136, %c0_47] : memref<64x384xf32, #tpu.memory_space<vmem>>, vector<8x384xf32>
    %cst_48 = arith.constant dense<0.000000e+00> : vector<8x256xf32>
    %138 = tpu.matmul %133, %10, %cst_48 {dimension_numbers = #tpu.dot_dimension_numbers<[1], [0], [0], [1], [0, 0, 1, 1], [], []>} : vector<8x128xf32>, vector<128x256xf32>, vector<8x256xf32> -> vector<8x256xf32>
    %139 = vector.extract_strided_slice %137 {offsets = [0, 0], sizes = [8, 256], strides = [1, 1]} : vector<8x384xf32> to vector<8x256xf32>
    %140 = arith.addf %138, %139 : vector<8x256xf32>
    %141 = arith.negf %140 : vector<8x256xf32>
    %142 = math.exp %141 : vector<8x256xf32>
    %cst_49 = arith.constant 1.000000e+00 : f32
    %143 = vector.broadcast %cst_49 : f32 to vector<8x256xf32>
    %144 = arith.addf %143, %142 : vector<8x256xf32>
    %145 = arith.divf %143, %144 : vector<8x256xf32>
    %146 = vector.extract_strided_slice %145 {offsets = [0, 0], sizes = [8, 128], strides = [1, 1]} : vector<8x256xf32> to vector<8x128xf32>
    %147 = vector.extract_strided_slice %145 {offsets = [0, 128], sizes = [8, 128], strides = [1, 1]} : vector<8x256xf32> to vector<8x128xf32>
    %148 = arith.mulf %147, %133 : vector<8x128xf32>
    %cst_50 = arith.constant dense<0.000000e+00> : vector<8x128xf32>
    %149 = tpu.matmul %148, %11, %cst_50 {dimension_numbers = #tpu.dot_dimension_numbers<[1], [0], [0], [1], [0, 0, 1, 1], [], []>} : vector<8x128xf32>, vector<128x128xf32>, vector<8x128xf32> -> vector<8x128xf32>
    %150 = vector.extract_strided_slice %137 {offsets = [0, 256], sizes = [8, 128], strides = [1, 1]} : vector<8x384xf32> to vector<8x128xf32>
    %151 = arith.addf %149, %150 : vector<8x128xf32>
    %152 = math.tanh %151 : vector<8x128xf32>
    %cst_51 = arith.constant 1.000000e+00 : f32
    %153 = vector.broadcast %cst_51 : f32 to vector<8x128xf32>
    %154 = arith.subf %153, %146 : vector<8x128xf32>
    %155 = arith.mulf %154, %133 : vector<8x128xf32>
    %156 = arith.mulf %146, %152 : vector<8x128xf32>
    %157 = arith.addf %155, %156 : vector<8x128xf32>
    %c6_i32 = arith.constant 6 : i32
    %c8_i32_52 = arith.constant 8 : i32
    %158 = arith.muli %c6_i32, %c8_i32_52 : i32
    %159 = tpu.assume_multiple %158, 8 : i32
    %160 = arith.index_cast %159 : i32 to index
    %c0_53 = arith.constant 0 : index
    %161 = vector.load %arg8[%160, %c0_53] : memref<64x384xf32, #tpu.memory_space<vmem>>, vector<8x384xf32>
    %cst_54 = arith.constant dense<0.000000e+00> : vector<8x256xf32>
    %162 = tpu.matmul %157, %10, %cst_54 {dimension_numbers = #tpu.dot_dimension_numbers<[1], [0], [0], [1], [0, 0, 1, 1], [], []>} : vector<8x128xf32>, vector<128x256xf32>, vector<8x256xf32> -> vector<8x256xf32>
    %163 = vector.extract_strided_slice %161 {offsets = [0, 0], sizes = [8, 256], strides = [1, 1]} : vector<8x384xf32> to vector<8x256xf32>
    %164 = arith.addf %162, %163 : vector<8x256xf32>
    %165 = arith.negf %164 : vector<8x256xf32>
    %166 = math.exp %165 : vector<8x256xf32>
    %cst_55 = arith.constant 1.000000e+00 : f32
    %167 = vector.broadcast %cst_55 : f32 to vector<8x256xf32>
    %168 = arith.addf %167, %166 : vector<8x256xf32>
    %169 = arith.divf %167, %168 : vector<8x256xf32>
    %170 = vector.extract_strided_slice %169 {offsets = [0, 0], sizes = [8, 128], strides = [1, 1]} : vector<8x256xf32> to vector<8x128xf32>
    %171 = vector.extract_strided_slice %169 {offsets = [0, 128], sizes = [8, 128], strides = [1, 1]} : vector<8x256xf32> to vector<8x128xf32>
    %172 = arith.mulf %171, %157 : vector<8x128xf32>
    %cst_56 = arith.constant dense<0.000000e+00> : vector<8x128xf32>
    %173 = tpu.matmul %172, %11, %cst_56 {dimension_numbers = #tpu.dot_dimension_numbers<[1], [0], [0], [1], [0, 0, 1, 1], [], []>} : vector<8x128xf32>, vector<128x128xf32>, vector<8x128xf32> -> vector<8x128xf32>
    %174 = vector.extract_strided_slice %161 {offsets = [0, 256], sizes = [8, 128], strides = [1, 1]} : vector<8x384xf32> to vector<8x128xf32>
    %175 = arith.addf %173, %174 : vector<8x128xf32>
    %176 = math.tanh %175 : vector<8x128xf32>
    %cst_57 = arith.constant 1.000000e+00 : f32
    %177 = vector.broadcast %cst_57 : f32 to vector<8x128xf32>
    %178 = arith.subf %177, %170 : vector<8x128xf32>
    %179 = arith.mulf %178, %157 : vector<8x128xf32>
    %180 = arith.mulf %170, %176 : vector<8x128xf32>
    %181 = arith.addf %179, %180 : vector<8x128xf32>
    %c7_i32 = arith.constant 7 : i32
    %c8_i32_58 = arith.constant 8 : i32
    %182 = arith.muli %c7_i32, %c8_i32_58 : i32
    %183 = tpu.assume_multiple %182, 8 : i32
    %184 = arith.index_cast %183 : i32 to index
    %c0_59 = arith.constant 0 : index
    %185 = vector.load %arg8[%184, %c0_59] : memref<64x384xf32, #tpu.memory_space<vmem>>, vector<8x384xf32>
    %cst_60 = arith.constant dense<0.000000e+00> : vector<8x256xf32>
    %186 = tpu.matmul %181, %10, %cst_60 {dimension_numbers = #tpu.dot_dimension_numbers<[1], [0], [0], [1], [0, 0, 1, 1], [], []>} : vector<8x128xf32>, vector<128x256xf32>, vector<8x256xf32> -> vector<8x256xf32>
    %187 = vector.extract_strided_slice %185 {offsets = [0, 0], sizes = [8, 256], strides = [1, 1]} : vector<8x384xf32> to vector<8x256xf32>
    %188 = arith.addf %186, %187 : vector<8x256xf32>
    %189 = arith.negf %188 : vector<8x256xf32>
    %190 = math.exp %189 : vector<8x256xf32>
    %cst_61 = arith.constant 1.000000e+00 : f32
    %191 = vector.broadcast %cst_61 : f32 to vector<8x256xf32>
    %192 = arith.addf %191, %190 : vector<8x256xf32>
    %193 = arith.divf %191, %192 : vector<8x256xf32>
    %194 = vector.extract_strided_slice %193 {offsets = [0, 0], sizes = [8, 128], strides = [1, 1]} : vector<8x256xf32> to vector<8x128xf32>
    %195 = vector.extract_strided_slice %193 {offsets = [0, 128], sizes = [8, 128], strides = [1, 1]} : vector<8x256xf32> to vector<8x128xf32>
    %196 = arith.mulf %195, %181 : vector<8x128xf32>
    %cst_62 = arith.constant dense<0.000000e+00> : vector<8x128xf32>
    %197 = tpu.matmul %196, %11, %cst_62 {dimension_numbers = #tpu.dot_dimension_numbers<[1], [0], [0], [1], [0, 0, 1, 1], [], []>} : vector<8x128xf32>, vector<128x128xf32>, vector<8x128xf32> -> vector<8x128xf32>
    %198 = vector.extract_strided_slice %185 {offsets = [0, 256], sizes = [8, 128], strides = [1, 1]} : vector<8x384xf32> to vector<8x128xf32>
    %199 = arith.addf %197, %198 : vector<8x128xf32>
    %200 = math.tanh %199 : vector<8x128xf32>
    %cst_63 = arith.constant 1.000000e+00 : f32
    %201 = vector.broadcast %cst_63 : f32 to vector<8x128xf32>
    %202 = arith.subf %201, %194 : vector<8x128xf32>
    %203 = arith.mulf %202, %181 : vector<8x128xf32>
    %204 = arith.mulf %194, %200 : vector<8x128xf32>
    %205 = arith.addf %203, %204 : vector<8x128xf32>
    %c8_i32_64 = arith.constant 8 : i32
    %c0_65 = arith.constant 0 : index
    %c0_66 = arith.constant 0 : index
    %206 = vector.load %arg6[%c0_65, %c0_66] : memref<8x128xf32, #tpu.memory_space<vmem>>, vector<8x128xf32>
    tpu.vector_store %arg6[%c0_65, %c0_66], %205 {strides = array<i32>} : memref<8x128xf32, #tpu.memory_space<vmem>>, vector<8x128xf32>,
    %c0_67 = arith.constant 0 : index
    %c0_68 = arith.constant 0 : index
    %207 = vector.load %arg7[%c0_67, %c0_68] : memref<8x128xf32, #tpu.memory_space<vmem>>, vector<8x128xf32>
    tpu.vector_store %arg7[%c0_67, %c0_68], %200 {strides = array<i32>} : memref<8x128xf32, #tpu.memory_space<vmem>>, vector<8x128xf32>,
    return
  }
  func.func @transform_0(%arg0: i32) -> (i32, i32) {
    %c0_i32 = arith.constant 0 : i32
    %c0_i32_0 = arith.constant 0 : i32
    return %arg0, %c0_i32 : i32, i32
  }
  func.func @transform_1(%arg0: i32) -> (i32, i32) {
    %c0_i32 = arith.constant 0 : i32
    %c0_i32_0 = arith.constant 0 : i32
    %c0_i32_1 = arith.constant 0 : i32
    return %c0_i32, %c0_i32_0 : i32, i32
  }
  func.func @transform_2(%arg0: i32) -> (i32, i32) {
    %c0_i32 = arith.constant 0 : i32
    %c0_i32_0 = arith.constant 0 : i32
    %c0_i32_1 = arith.constant 0 : i32
    return %c0_i32, %c0_i32_0 : i32, i32
  }
  func.func @transform_3(%arg0: i32) -> (i32, i32) {
    %c0_i32 = arith.constant 0 : i32
    %c0_i32_0 = arith.constant 0 : i32
    %c0_i32_1 = arith.constant 0 : i32
    return %c0_i32, %c0_i32_0 : i32, i32
  }
  func.func @transform_4(%arg0: i32) -> (i32, i32) {
    %c0_i32 = arith.constant 0 : i32
    %c0_i32_0 = arith.constant 0 : i32
    %c0_i32_1 = arith.constant 0 : i32
    return %c0_i32, %c0_i32_0 : i32, i32
  }
  func.func @transform_5(%arg0: i32) -> (i32, i32) {
    %c0_i32 = arith.constant 0 : i32
    %c0_i32_0 = arith.constant 0 : i32
    %c0_i32_1 = arith.constant 0 : i32
    return %c0_i32, %c0_i32_0 : i32, i32
  }
  func.func @transform_6(%arg0: i32) -> (i32, i32) {
    %c0_i32 = arith.constant 0 : i32
    %c0_i32_0 = arith.constant 0 : i32
    %c0_i32_1 = arith.constant 0 : i32
    return %c0_i32, %c0_i32_0 : i32, i32
  }
}

</mosaic_0001>

<bundles_post_ra>
// kernel: tpu_custom_call.1
= control target key start
LH: loop header
LB: loop body
LE: loop exit
PB: predicated region body
PF: predicated region fallthrough
CT: control target
= control target key end

     0   :  { %12 = vsyncpa [#allocation4], 0  ;;  %s3446_s0 = inlined_call_operand.vmem [shape: f32[64,16], index: 0, kind: input, shape index: {}]   ;;  %s3447_s1 = inlined_call_operand.vmem [shape: f32[16,384], index: 1, kind: input, shape index: {}]   ;;  %s3448_s2 = inlined_call_operand.vmem [shape: f32[1,384], index: 2, kind: input, shape index: {}]   ;;  %s3449_s3 = inlined_call_operand.hbm [shape: f32[128,256], index: 3, kind: input, shape index: {}]   ;;  %s3450_s4 = inlined_call_operand.hbm [shape: f32[128,128], index: 4, kind: input, shape index: {}]   ;;  %s3451_s5 = inlined_call_operand.hbm [shape: f32[8,128], index: 5, kind: output, shape index: {0}]   ;;  %s3452_s6 = inlined_call_operand.hbm [shape: f32[8,128], index: 6, kind: output, shape index: {1}]  }
   0x1   :  { %13 = vsyncpa [#allocation7], 0 }
   0x2   :  { %14 = vsyncpa [#allocation5], 0 }
   0x3   :  { %15 = vsyncpa [#allocation10], 0  ;;  %s2913_s21 = smov [#allocation3]   ;;  %s2817_s25 = scalar_lea.hbm %s3449_s3, 4096 }
   0x4   :  { %s27_s22 = sshll.u32 %s2913_s21, 4  ;;  %p2818_p0 = scmp.ne.s32.totalorder %s3449_s3, %s2817_s25  ;;  %s28_s22 = int_to_ptr.vmem [resolvable:$true] %s27_s22 }
   0x5   :  { %p2821_p1 = scmp.lt.u32.totalorder %s2817_s25, %s3449_s3 }
   0x7   :  { %p2823_p2 = pnand %p2821_p1, %p2818_p0 }
   0x9   :  { %2826 = shalt.err (!%p2823_p2)
}
   0xa   :  { %s2827_s30 = scalar_lea.vmem %s28_s22, 4096  ;;  %p2832_p4 = scmp.lt.s32.totalorder %s28_s22, %s28_s22 }
   0xb   :  { %p2828_p3 = scmp.ne.s32.totalorder %s28_s22, %s2827_s30  ;;  %p2833_p5 = scmp.lt.s32.totalorder %s2827_s30, %s2827_s30 }
   0xd   :  { %p2834_p6 = por %p2833_p5, %p2832_p4 }
   0xf   :  { %p2835_p7 = pnand %p2834_p6, %p2828_p3 }
  0x11   :  { %2838 = shalt.err (!%p2835_p7)
}
  0x12   :  { %s2914_s7 = smov 256   ;;  %s2915_s8 = smov 16  }
  0x13   :  { %33 = dma.hbm_to_vmem [thread:$0]  %s3449_s3, 4096, %s28_s22, [#allocation4], %s2914_s7, %s2914_s7, %s2915_s8  }
  0x14   :  { %s2916_s11 = smov [#allocation6]   ;;  %s2839_s15 = scalar_lea.hbm %s3450_s4, 2048 }
  0x15   :  { %s39_s12 = sshll.u32 %s2916_s11, 4  ;;  %p2840_p8 = scmp.ne.s32.totalorder %s3450_s4, %s2839_s15  ;;  %s40_s12 = int_to_ptr.vmem [resolvable:$true] %s39_s12 }
  0x16   :  { %p2843_p9 = scmp.lt.u32.totalorder %s2839_s15, %s3450_s4 }
  0x18   :  { %p2845_p10 = pnand %p2843_p9, %p2840_p8 }
  0x1a   :  { %2848 = shalt.err (!%p2845_p10)
}
  0x1b   :  { %s2849_s20 = scalar_lea.vmem %s40_s12, 2048  ;;  %p2854_p12 = scmp.lt.s32.totalorder %s40_s12, %s40_s12 }
  0x1c   :  { %p2850_p11 = scmp.ne.s32.totalorder %s40_s12, %s2849_s20  ;;  %p2855_p13 = scmp.lt.s32.totalorder %s2849_s20, %s2849_s20 }
  0x1e   :  { %p2856_p0 = por %p2855_p13, %p2854_p12 }
  0x20   :  { %p2857_p1 = pnand %p2856_p0, %p2850_p11 }
  0x22   :  { %2860 = shalt.err (!%p2857_p1)
}
  0x23   :  { %s2917_s3 = smov 128   ;;  %s2918_s21 = smov 8  }
  0x24   :  { %45 = dma.hbm_to_vmem [thread:$0]  %s3450_s4, 2048, %s40_s12, [#allocation7], %s2917_s3, %s2917_s3, %s2918_s21  }
  0x25   :  { %2905 = dma.done.wait [#allocation4], 4096  }
  0x26   :  { %2906 = vsyncadd [#allocation4], 4294963200 }
  0x27   :  { %2907 = dma.done.wait [#allocation7], 2048  }
  0x28   :  { %2908 = vsyncadd [#allocation7], 4294965248  ;;  %v2919_v0 = vmov 0.0   ;;  %v67_v1 = vld [vmem:[%s3447_s1 + $0x8] sm:$0xff]  ;;  %v70_v2 = vld [vmem:[%s3447_s1 + $0x20] sm:$0xff]  ;;  %vm89_vm0 = vcmask 130048  }
  0x29   :  { %178 = vmatprep.mubr.f32.mxu0 %v2919_v0  ;;  %v66_v3 = vld [vmem:[%s3447_s1] sm:$0xff]  ;;  %v2238_v4 = vpack.c.bf16 %v70_v2, %v67_v1  ;;  %v69_v5 = vld [vmem:[%s3447_s1 + $0x18] sm:$0xff]  ;;  %v359_v9 = vld [vmem:[#allocation3 + $0x18] sm:$0xff]  ;;  %vm2921_vm1 = vmmov 0   ;;  %s2923_s27 = smov [#allocation8]  }
  0x2a   :  { %v58_v6 = vld [vmem:[%s3446_s0] sm:$0xff]  ;;  %v357_v7 = vld [vmem:[#allocation3 + $0x8] sm:$0xff]  ;;  %v2240_v8 = vpack.c.bf16 %v69_v5, %v66_v3  ;;  %v356_v10 = vld [vmem:[#allocation3] sm:$0xff]  ;;  %s1733_s28 = sshll.u32 %s2923_s27, 4  ;;  %s1734_s28 = int_to_ptr.vmem [resolvable:$true] %s1733_s28 }
  0x2b   :  { %v358_v11 = vld [vmem:[#allocation3 + $0x10] sm:$0xff]  ;;  %1946 = vmatprep.mubr.msk.f32.mxu1 %vm89_vm0, %v58_v6  ;;  %2239 = vmatprep.subr.bf16.mxu0 %v2238_v4  ;;  %v3000_v12 = vpack.c.bf16 %v359_v9, %v357_v7  ;;  %v361_v13 = vld [vmem:[#allocation3 + $0x28] sm:$0xff]  ;;  %v363_v14 = vld [vmem:[#allocation3 + $0x38] sm:$0xff] }
  0x2c   :  { %2241 = vmatpush1.bf16.msra.mxu0 %v2240_v8  ;;  %v3002_v15 = vpack.c.bf16 %v358_v11, %v356_v10  ;;  %v3005_v16 = vpack.c.bf16 %v363_v14, %v361_v13  ;;  %v360_v17 = vld [vmem:[#allocation3 + $0x20] sm:$0xff]  ;;  %v362_v18 = vld [vmem:[#allocation3 + $0x30] sm:$0xff]  ;;  %v365_v19 = vld [vmem:[#allocation3 + $0x48] sm:$0xff] }
  0x2d   :  { %2247 = vmatprep.subr.bf16.mxu0 %v3000_v12  ;;  %v367_v20 = vld [vmem:[#allocation3 + $0x58] sm:$0xff]  ;;  %v3013_v22 = vpack.c.bf16 %v362_v18, %v360_v17  ;;  %v364_v24 = vld [vmem:[#allocation3 + $0x40] sm:$0xff]  ;;  %v366_v25 = vld [vmem:[#allocation3 + $0x50] sm:$0xff] }
  0x2e   :  { %v59_v21 = vld [vmem:[%s3446_s0 + $0x8] sm:$0xff]  ;;  %v3016_v23 = vpack.c.bf16 %v367_v20, %v365_v19  ;;  %v369_v26 = vld [vmem:[#allocation3 + $0x68] sm:$0xff]  ;;  %v60_v28 = vld [vmem:[%s3446_s0 + $0x10] sm:$0xff]  ;;  %v3024_v29 = vpack.c.bf16 %v366_v25, %v364_v24 }
  0x2f   :  { %1764 = vmatmul.mubr.msk.f32.vlgmr.msra.gmra.mrb[0].mxu0 %vm89_vm0, %v58_v6  ;;  %v371_v27 = vld [vmem:[#allocation3 + $0x78] sm:$0xff]  ;;  %v368_v31 = vld [vmem:[#allocation3 + $0x60] sm:$0xff]  ;;  %v370_v32 = vld [vmem:[#allocation3 + $0x70] sm:$0xff]  ;;  %v2920_v6 = vmov 0.0|0.0  }
  0x30   :  { %2249 = vmatpush1.bf16.msra.mxu0 %v3002_v15  ;;  %184 = vmatprep.mubr.f32.mxu0 %v2919_v0  ;;  %v3027_v30 = vpack.c.bf16 %v371_v27, %v369_v26  ;;  %v373_v33 = vld [vmem:[#allocation3 + $0x88] sm:$0xff]  ;;  %v375_v34 = vld [vmem:[#allocation3 + $0x98] sm:$0xff]  ;;  %v68_v35 = vld [vmem:[%s3447_s1 + $0x10] sm:$0xff]  ;;  %v3041_v38 = vpack.c.bf16 %v370_v32, %v368_v31 }
  0x31   :  { %2251 = vmatprep.subr.bf16.mxu0 %v3005_v16  ;;  %v71_v36 = vld [vmem:[%s3447_s1 + $0x28] sm:$0xff]  ;;  %v61_v37 = vld [vmem:[%s3446_s0 + $0x18] sm:$0xff]  ;;  %v3044_v40 = vpack.c.bf16 %v375_v34, %v373_v33  ;;  %v372_v41 = vld [vmem:[#allocation3 + $0x80] sm:$0xff] }
  0x32   :  { %v2242_v39 = vpack.c.bf16 %v71_v36, %v68_v35  ;;  %v374_v42 = vld [vmem:[#allocation3 + $0x90] sm:$0xff]  ;;  %v377_v43 = vld [vmem:[#allocation3 + $0xa8] sm:$0xff]  ;;  %v379_v44 = vld [vmem:[#allocation3 + $0xb8] sm:$0xff]  ;;  %v74_v35 = vlaneseq }
  0x33   :  { %1765 = vmatmul.mubr.msk.f32.gmra.mrb[2].mxu0 %vm89_vm0, %v59_v21  ;;  %v62_v45 = vld [vmem:[%s3446_s0 + $0x20] sm:$0xff]  ;;  %v3052_v46 = vpack.c.bf16 %v374_v42, %v372_v41  ;;  %v3055_v47 = vpack.c.bf16 %v379_v44, %v377_v43  ;;  %v376_v48 = vld [vmem:[#allocation3 + $0xa0] sm:$0xff]  ;;  %v381_v50 = vld [vmem:[#allocation3 + $0xc8] sm:$0xff] }
  0x34   :  { %2253 = vmatpush1.bf16.msra.mxu0 %v3013_v22  ;;  %190 = vmatprep.mubr.f32.mxu0 %v2919_v0  ;;  %v378_v49 = vld [vmem:[#allocation3 + $0xb0] sm:$0xff]  ;;  %v383_v51 = vld [vmem:[#allocation3 + $0xd8] sm:$0xff]  ;;  %v380_v55 = vld [vmem:[#allocation3 + $0xc0] sm:$0xff]  ;;  %v75_v36 = vshrl.u32 %v74_v35, 7 }
  0x35   :  { %2255 = vmatprep.subr.bf16.mxu0 %v3016_v23  ;;  %2243 = vmatprep.subr.bf16.mxu1 %v2242_v39  ;;  %v63_v52 = vld [vmem:[%s3446_s0 + $0x28] sm:$0xff]  ;;  %v3065_v53 = vpack.c.bf16 %v378_v49, %v376_v48  ;;  %v3068_v54 = vpack.c.bf16 %v383_v51, %v381_v50  ;;  %v382_v56 = vld [vmem:[#allocation3 + $0xd0] sm:$0xff]  ;;  %v385_v57 = vld [vmem:[#allocation3 + $0xe8] sm:$0xff] }
  0x36   :  { %2245 = vmatpush3.bf16.msra.mxu1 %v2242_v39  ;;  %v387_v58 = vld [vmem:[#allocation3 + $0xf8] sm:$0xff]  ;;  %v64_v59 = vld [vmem:[%s3446_s0 + $0x30] sm:$0xff]  ;;  %v3078_v60 = vpack.c.bf16 %v382_v56, %v380_v55  ;;  %v386_v63 = vld [vmem:[#allocation3 + $0xf0] sm:$0xff] }
  0x37   :  { %1766 = vmatmul.mubr.msk.f32.gmra.mrb[4].mxu0 %vm89_vm0, %v60_v28  ;;  %v3081_v61 = vpack.c.bf16 %v387_v58, %v385_v57  ;;  %v384_v62 = vld [vmem:[#allocation3 + $0xe0] sm:$0xff]  ;;  %v65_v1 = vld [vmem:[%s3446_s0 + $0x38] sm:$0xff]  ;;  %2278 = vmatprep.subr.bf16.mxu1 %v2920_v6  ;;  %v390_v7 = vld [vmem:[#allocation6 + $0x10] sm:$0xff]  ;;  %v80_v57 = vsub.s32 1, %v75_v36 }
  0x38   :  { %2257 = vmatpush1.bf16.msra.mxu0 %v3024_v29  ;;  %196 = vmatprep.mubr.f32.mxu0 %v2919_v0  ;;  %v3091_v2 = vpack.c.bf16 %v386_v63, %v384_v62  ;;  %v388_v3 = vld [vmem:[#allocation6] sm:$0xff]  ;;  %v389_v4 = vld [vmem:[#allocation6 + $0x8] sm:$0xff]  ;;  %v391_v8 = vld [vmem:[#allocation6 + $0x18] sm:$0xff] }
  0x39   :  { %2259 = vmatprep.subr.bf16.mxu0 %v3027_v30  ;;  %1947 = vmatmul.mubr.msk.f32.vlgmr.msra.gmra.mrb[0].mxu1 %vm89_vm0, %v59_v21  ;;  %v3117_v5 = vpack.c.bf16 %v389_v4, %v388_v3  ;;  %v3122_v9 = vpack.c.bf16 %v391_v8, %v390_v7  ;;  %v392_v10 = vld [vmem:[#allocation6 + $0x20] sm:$0xff]  ;;  %v393_v11 = vld [vmem:[#allocation6 + $0x28] sm:$0xff]  ;;  %v394_v14 = vld [vmem:[#allocation6 + $0x30] sm:$0xff] }
  0x3a   :  { %1949 = vmatprep.mubr.msk.f32.mxu1 %vm89_vm0, %v60_v28  ;;  %v3126_v13 = vpack.c.bf16 %v393_v11, %v392_v10  ;;  %v395_v17 = vld [vmem:[#allocation6 + $0x38] sm:$0xff]  ;;  %v396_v19 = vld [vmem:[#allocation6 + $0x40] sm:$0xff]  ;;  %v397_v20 = vld [vmem:[#allocation6 + $0x48] sm:$0xff] }
  0x3b   :  { %1767 = vmatmul.mubr.msk.f32.gmra.mrb[6].mxu0 %vm89_vm0, %v61_v37  ;;  %2280 = vmatpush3.bf16.msra.mxu1 %v3117_v5  ;;  %v3130_v18 = vpack.c.bf16 %v395_v17, %v394_v14  ;;  %v3134_v21 = vpack.c.bf16 %v397_v20, %v396_v19  ;;  %v398_v24 = vld [vmem:[#allocation6 + $0x50] sm:$0xff]  ;;  %v399_v25 = vld [vmem:[#allocation6 + $0x58] sm:$0xff]  ;;  %v400_v27 = vld [vmem:[#allocation6 + $0x60] sm:$0xff]  ;;  %v76_v19 = vsub.s32 0, %v75_v36 }
  0x3c   :  { %2261 = vmatpush1.bf16.msra.mxu0 %v3041_v38  ;;  %202 = vmatprep.mubr.f32.mxu0 %v2919_v0  ;;  %v3138_v26 = vpack.c.bf16 %v399_v25, %v398_v24  ;;  %v401_v28 = vld [vmem:[#allocation6 + $0x68] sm:$0xff]  ;;  %v402_v32 = vld [vmem:[#allocation6 + $0x70] sm:$0xff]  ;;  %v403_v33 = vld [vmem:[#allocation6 + $0x78] sm:$0xff] }
  0x3d   :  { %2263 = vmatprep.subr.bf16.mxu0 %v3044_v40  ;;  %1950 = vmatmul.mubr.msk.f32.gmra.mrb[2].mxu1 %vm89_vm0, %v61_v37  ;;  %v3143_v31 = vpack.c.bf16 %v401_v28, %v400_v27  ;;  %v3147_v34 = vpack.c.bf16 %v403_v33, %v402_v32  ;;  %v84_v37 = vsub.s32 2, %v75_v36  ;;  %v72_v39 = vld [vmem:[%s3448_s2] sm:$0x7]  ;;  %s2922_s2 = smov [#allocation9]  }
  0x3e   :  { %1952 = vmatprep.mubr.msk.f32.mxu1 %vm89_vm0, %v62_v45  ;;  %2281 = vmatprep.subr.bf16.mxu1 %v2920_v6  ;;  %v3190_v20 = vrot.slane %v72_v39, %v76_v19  ;;  %s1743_s26 = sshll.u32 %s2922_s2, 4  ;;  %s1744_s26 = int_to_ptr.vmem [resolvable:$true] %s1743_s26 }
  0x3f   :  { %1768 = vmatmul.mubr.msk.f32.gmra.mrb[8].mxu0 %vm89_vm0, %v62_v45  ;;  %2283 = vmatpush3.bf16.msra.mxu1 %v3122_v9  ;;  %v85_v41 = vrot.slane %v72_v39, %v84_v37  ;;  %s2861_s29 = scalar_lea.vmem %s1744_s26, 128  ;;  %p2866_p3 = scmp.lt.s32.totalorder %s1744_s26, %s1744_s26 }
  0x40   :  { %2265 = vmatpush1.bf16.msra.mxu0 %v3052_v46  ;;  %208 = vmatprep.mubr.f32.mxu0 %v2919_v0  ;;  %p2862_p2 = scmp.ne.s32.totalorder %s1744_s26, %s2861_s29  ;;  %p2867_p4 = scmp.lt.s32.totalorder %s2861_s29, %s2861_s29 }
  0x41   :  { %2267 = vmatprep.subr.bf16.mxu0 %v3055_v47  ;;  %1953 = vmatmul.mubr.msk.f32.gmra.mrb[4].mxu1 %vm89_vm0, %v63_v52 }
  0x42   :  { %1955 = vmatprep.mubr.msk.f32.mxu1 %vm89_vm0, %v64_v59  ;;  %2284 = vmatprep.subr.bf16.mxu1 %v2920_v6  ;;  %p2868_p5 = por %p2867_p4, %p2866_p3 }
  0x43   :  { %1769 = vmatmul.mubr.msk.f32.gmra.mrb[10].mxu0 %vm89_vm0, %v63_v52  ;;  %2286 = vmatpush3.bf16.msra.mxu1 %v3126_v13 }
  0x44   :  { %2269 = vmatpush1.bf16.msra.mxu0 %v3065_v53  ;;  %214 = vmatprep.mubr.f32.mxu0 %v2919_v0  ;;  %p2869_p6 = pnand %p2868_p5, %p2862_p2 }
  0x45   :  { %2271 = vmatprep.subr.bf16.mxu0 %v3068_v54  ;;  %1956 = vmatmul.mubr.msk.f32.gmra.mrb[6].mxu1 %vm89_vm0, %v65_v1 }
  0x46   :  { %2287 = vmatprep.subr.bf16.mxu1 %v2920_v6  ;;  %1990 = vmatprep.mubr.msk.f32.mxu1 %vm2921_vm1, %v2919_v0 }
  0x47   :  { %1770 = vmatmul.mubr.msk.f32.gmra.mrb[12].mxu0 %vm89_vm0, %v64_v59  ;;  %2289 = vmatpush3.bf16.msra.mxu1 %v3130_v18 }
  0x48   :  { %2273 = vmatpush1.bf16.msra.mxu0 %v3078_v60  ;;  %220 = vmatprep.mubr.f32.mxu0 %v2919_v0 }
  0x49   :  { %2275 = vmatprep.subr.bf16.mxu0 %v3081_v61  ;;  %2290 = vmatprep.subr.bf16.mxu1 %v2920_v6 }
  0x4b   :  { %1771 = vmatmul.mubr.msk.f32.gmra.mrb[14].mxu0 %vm89_vm0, %v65_v1  ;;  %2292 = vmatpush3.bf16.msra.mxu1 %v3134_v21  ;;  %v3169_v1 = vrot.slane %v72_v39, %v80_v57 }
  0x4c   :  { %2277 = vmatpush1.bf16.msra.mxu0 %v3091_v2  ;;  %475 = vmatprep.mubr.f32.mxu0 %v2919_v0 }
  0x4d   :  { %2303 = vmatprep.subr.bf16.mxu0 %v3000_v12  ;;  %2293 = vmatprep.subr.bf16.mxu1 %v2920_v6 }
  0x4f   :  { %476 = vmatmul.mubr.f32.vlgmr.msra.gmra.mrb[0].mxu0 %v2919_v0  ;;  %2295 = vmatpush3.bf16.msra.mxu1 %v3138_v26 }
  0x50   :  { %2305 = vmatpush1.bf16.msra.mxu0 %v3002_v15  ;;  %640 = vmatprep.mubr.f32.mxu0 %v2919_v0 }
  0x51   :  { %2307 = vmatprep.subr.bf16.mxu0 %v3005_v16  ;;  %2296 = vmatprep.subr.bf16.mxu1 %v2920_v6 }
  0x53   :  { %2298 = vmatpush3.bf16.msra.mxu1 %v3143_v31 }
  0x54   :  { %2309 = vmatpush1.bf16.msra.mxu0 %v3013_v22  ;;  %2299 = vmatprep.subr.bf16.mxu1 %v2920_v6 }
  0x55   :  { %2311 = vmatprep.subr.bf16.mxu0 %v3016_v23 }
  0x57   :  { %2301 = vmatpush3.bf16.msra.mxu1 %v3147_v34 }
  0x58   :  { %2313 = vmatpush1.bf16.msra.mxu0 %v3024_v29  ;;  %2334 = vmatprep.subr.bf16.mxu1 %v2920_v6 }
  0x59   :  { %2315 = vmatprep.subr.bf16.mxu0 %v3027_v30 }
  0x5c   :  { %2317 = vmatpush1.bf16.msra.mxu0 %v3041_v38 }
  0x5d   :  { %2319 = vmatprep.subr.bf16.mxu0 %v3044_v40 }
  0x60   :  { %2321 = vmatpush1.bf16.msra.mxu0 %v3052_v46 }
  0x61   :  { %2323 = vmatprep.subr.bf16.mxu0 %v3055_v47 }
  0x64   :  { %2325 = vmatpush1.bf16.msra.mxu0 %v3065_v53 }
  0x65   :  { %2327 = vmatprep.subr.bf16.mxu0 %v3068_v54 }
  0x68   :  { %2329 = vmatpush1.bf16.msra.mxu0 %v3078_v60 }
  0x69   :  { %2331 = vmatprep.subr.bf16.mxu0 %v3081_v61 }
  0x6c   :  { %2333 = vmatpush1.bf16.msra.mxu0 %v3091_v2 }
  0x6d   :  { %2359 = vmatprep.subr.bf16.mxu0 %v3000_v12 }
 0x10c   :  { %v1948_v42 = vpop.f32.mrb[0].mxu1 }
 0x10d   :  { %v3155_v43 = vadd.f32 %v1948_v42, %v85_v41  ;;  %v293_v44 = vpop.f32.mrb[1].mxu1 }
 0x10e   :  { %v294_v32 = vadd.f32 %v293_v44, %v85_v41 }
 0x110   :  { %v1951_v45 = vpop.f32.mrb[2].mxu1 }
 0x111   :  { %v3157_v48 = vadd.f32 %v1951_v45, %v85_v41  ;;  %v303_v49 = vpop.f32.mrb[3].mxu1 }
 0x112   :  { %v3159_v50 = vadd.f32 %v303_v49, %v85_v41 }
 0x114   :  { %v1954_v51 = vpop.f32.mrb[4].mxu1 }
 0x115   :  { %v3161_v52 = vadd.f32 %v1954_v51, %v85_v41  ;;  %v313_v55 = vpop.f32.mrb[5].mxu1 }
 0x116   :  { %v3163_v56 = vadd.f32 %v313_v55, %v85_v41 }
 0x118   :  { %v1957_v58 = vpop.f32.mrb[6].mxu1 }
 0x119   :  { %v3165_v59 = vadd.f32 %v1957_v58, %v85_v41  ;;  %v323_v62 = vpop.f32.mrb[7].mxu1 }
 0x11a   :  { %v3167_v63 = vadd.f32 %v323_v62, %v85_v41 }
 0x122   :  { %v477_v3 = vpop.f32.mrb[0].mxu0 }
 0x123   :  { %v479_v4 = vpop.f32.mrb[1].mxu0  ;;  %v2694_v24 = vadd.f32 %v477_v3, %v3190_v20 }
 0x124   :  { %v2695_v7 = vadd.f32 %v479_v4, %v3169_v1 }
 0x125   :  { %v1780_v25 = vmul.f32 -1.442695, %v2694_v24 }
 0x126   :  { %v1781_v8 = vmul.f32 -1.442695, %v2695_v7 }
 0x128   :  { %2737 = vpow2.f32 %v1781_v8 }
 0x132   :  { %v2738_v10 = vpop.eup %2737 }
 0x133   :  { %v489_v11 = vadd.f32 1.0, %v2738_v10 }
 0x135   :  { %2739 = vrcp.f32 %v489_v11 }
 0x136   :  { %2741 = vpow2.f32 %v1780_v25 }
 0x13f   :  { %v2740_v14 = vpop.eup %2739 }
 0x140   :  { %v494_v17 = vmul.f32 0.0, %v2740_v14  ;;  %v2742_v27 = vpop.eup %2741 }
 0x141   :  { %v488_v28 = vadd.f32 1.0, %v2742_v27 }
 0x142   :  { %1991 = vmatmul.mubr.f32.vlgmr.msra.gmra.mrb[8].mxu1 %v494_v17 }
 0x143   :  { %2336 = vmatpush3.bf16.msra.mxu1 %v3117_v5  ;;  %2025 = vmatprep.mubr.msk.f32.mxu1 %vm2921_vm1, %v2919_v0  ;;  %2743 = vrcp.f32 %v488_v28 }
 0x144   :  { %2337 = vmatprep.subr.bf16.mxu1 %v2920_v6 }
 0x147   :  { %2339 = vmatpush3.bf16.msra.mxu1 %v3122_v9 }
 0x148   :  { %2340 = vmatprep.subr.bf16.mxu1 %v2920_v6 }
 0x14b   :  { %2342 = vmatpush3.bf16.msra.mxu1 %v3126_v13 }
 0x14c   :  { %2343 = vmatprep.subr.bf16.mxu1 %v2920_v6 }
 0x14d   :  { %v2744_v42 = vpop.eup %2743 }
 0x14e   :  { %v566_v45 = vsub.f32 1.0, %v2744_v42 }
 0x14f   :  { %2345 = vmatpush3.bf16.msra.mxu1 %v3130_v18 }
 0x150   :  { %2346 = vmatprep.subr.bf16.mxu1 %v2920_v6  ;;  %v567_v51 = vmul.f32 0.0, %v566_v45 }
 0x153   :  { %2348 = vmatpush3.bf16.msra.mxu1 %v3134_v21 }
 0x154   :  { %2349 = vmatprep.subr.bf16.mxu1 %v2920_v6 }
 0x157   :  { %2351 = vmatpush3.bf16.msra.mxu1 %v3138_v26 }
 0x158   :  { %2352 = vmatprep.subr.bf16.mxu1 %v2920_v6 }
 0x15b   :  { %2354 = vmatpush3.bf16.msra.mxu1 %v3143_v31 }
 0x15c   :  { %2355 = vmatprep.subr.bf16.mxu1 %v2920_v6 }
 0x15f   :  { %2357 = vmatpush3.bf16.msra.mxu1 %v3147_v34 }
 0x160   :  { %2390 = vmatprep.subr.bf16.mxu1 %v2920_v6 }
 0x215   :  { %v561_v33 = vpop.f32.mrb[8].mxu1 }
 0x216   :  { %v562_v35 = vadd.f32 %v561_v33, %v294_v32  ;;  %v1992_v37 = vpop.f32.mrb[9].mxu1 }
 0x218   :  { %2745 = vtanh.f32 %v562_v35 }
 0x222   :  { %v2746_v49 = vpop.eup %2745 }
 0x223   :  { %v568_v55 = vmul.f32 %v2746_v49, %v2744_v42 }
 0x225   :  { %v569_v36 = vadd.f32 %v568_v55, %v567_v51 }
 0x227   :  { %641 = vmatmul.mubr.f32.vlgmr.msra.gmra.mrb[2].mxu0 %v569_v36 }
 0x228   :  { %2361 = vmatpush1.bf16.msra.mxu0 %v3002_v15  ;;  %805 = vmatprep.mubr.f32.mxu0 %v2919_v0 }
 0x229   :  { %2363 = vmatprep.subr.bf16.mxu0 %v3005_v16 }
 0x22c   :  { %2365 = vmatpush1.bf16.msra.mxu0 %v3013_v22 }
 0x22d   :  { %2367 = vmatprep.subr.bf16.mxu0 %v3016_v23 }
 0x230   :  { %2369 = vmatpush1.bf16.msra.mxu0 %v3024_v29 }
 0x231   :  { %2371 = vmatprep.subr.bf16.mxu0 %v3027_v30 }
 0x234   :  { %2373 = vmatpush1.bf16.msra.mxu0 %v3041_v38 }
 0x235   :  { %2375 = vmatprep.subr.bf16.mxu0 %v3044_v40 }
 0x238   :  { %2377 = vmatpush1.bf16.msra.mxu0 %v3052_v46 }
 0x239   :  { %2379 = vmatprep.subr.bf16.mxu0 %v3055_v47 }
 0x23c   :  { %2381 = vmatpush1.bf16.msra.mxu0 %v3065_v53 }
 0x23d   :  { %2383 = vmatprep.subr.bf16.mxu0 %v3068_v54 }
 0x240   :  { %2385 = vmatpush1.bf16.msra.mxu0 %v3078_v60 }
 0x241   :  { %2387 = vmatprep.subr.bf16.mxu0 %v3081_v61 }
 0x244   :  { %2389 = vmatpush1.bf16.msra.mxu0 %v3091_v2 }
 0x245   :  { %2415 = vmatprep.subr.bf16.mxu0 %v3000_v12 }
 0x2fa   :  { %v642_v39 = vpop.f32.mrb[2].mxu0 }
 0x2fb   :  { %v644_v41 = vpop.f32.mrb[3].mxu0  ;;  %v2696_v7 = vadd.f32 %v642_v39, %v3190_v20 }
 0x2fc   :  { %v2697_v44 = vadd.f32 %v644_v41, %v3169_v1 }
 0x2fd   :  { %v1782_v8 = vmul.f32 -1.442695, %v2696_v7 }
 0x2fe   :  { %v1783_v57 = vmul.f32 -1.442695, %v2697_v44 }
 0x300   :  { %2747 = vpow2.f32 %v1783_v57 }
 0x30a   :  { %v2748_v58 = vpop.eup %2747 }
 0x30b   :  { %v654_v62 = vadd.f32 1.0, %v2748_v58 }
 0x30d   :  { %2749 = vrcp.f32 %v654_v62 }
 0x30e   :  { %2751 = vpow2.f32 %v1782_v8 }
 0x317   :  { %v2750_v3 = vpop.eup %2749 }
 0x318   :  { %v659_v4 = vmul.f32 %v2750_v3, %v569_v36  ;;  %v2752_v10 = vpop.eup %2751 }
 0x319   :  { %v653_v11 = vadd.f32 1.0, %v2752_v10 }
 0x31a   :  { %2026 = vmatmul.mubr.f32.vlgmr.msra.gmra.mrb[10].mxu1 %v659_v4 }
 0x31b   :  { %2392 = vmatpush3.bf16.msra.mxu1 %v3117_v5  ;;  %2060 = vmatprep.mubr.msk.f32.mxu1 %vm2921_vm1, %v2919_v0  ;;  %2753 = vrcp.f32 %v653_v11 }
 0x31c   :  { %2393 = vmatprep.subr.bf16.mxu1 %v2920_v6 }
 0x31f   :  { %2395 = vmatpush3.bf16.msra.mxu1 %v3122_v9 }
 0x320   :  { %2396 = vmatprep.subr.bf16.mxu1 %v2920_v6 }
 0x323   :  { %2398 = vmatpush3.bf16.msra.mxu1 %v3126_v13 }
 0x324   :  { %2399 = vmatprep.subr.bf16.mxu1 %v2920_v6 }
 0x325   :  { %v2754_v24 = vpop.eup %2753 }
 0x326   :  { %v731_v25 = vsub.f32 1.0, %v2754_v24 }
 0x327   :  { %2401 = vmatpush3.bf16.msra.mxu1 %v3130_v18 }
 0x328   :  { %2402 = vmatprep.subr.bf16.mxu1 %v2920_v6  ;;  %v732_v28 = vmul.f32 %v731_v25, %v569_v36 }
 0x32b   :  { %2404 = vmatpush3.bf16.msra.mxu1 %v3134_v21 }
 0x32c   :  { %2405 = vmatprep.subr.bf16.mxu1 %v2920_v6 }
 0x32f   :  { %2407 = vmatpush3.bf16.msra.mxu1 %v3138_v26 }
 0x330   :  { %2408 = vmatprep.subr.bf16.mxu1 %v2920_v6 }
 0x333   :  { %2410 = vmatpush3.bf16.msra.mxu1 %v3143_v31 }
 0x334   :  { %2411 = vmatprep.subr.bf16.mxu1 %v2920_v6 }
 0x337   :  { %2413 = vmatpush3.bf16.msra.mxu1 %v3147_v34 }
 0x338   :  { %2446 = vmatprep.subr.bf16.mxu1 %v2920_v6 }
 0x3ed   :  { %v726_v14 = vpop.f32.mrb[10].mxu1 }
 0x3ee   :  { %v727_v17 = vadd.f32 %v726_v14, %v3155_v43  ;;  %v2027_v19 = vpop.f32.mrb[11].mxu1 }
 0x3f0   :  { %2755 = vtanh.f32 %v727_v17 }
 0x3fa   :  { %v2756_v27 = vpop.eup %2755 }
 0x3fb   :  { %v733_v32 = vmul.f32 %v2756_v27, %v2754_v24 }
 0x3fd   :  { %v734_v33 = vadd.f32 %v733_v32, %v732_v28 }
 0x3ff   :  { %806 = vmatmul.mubr.f32.vlgmr.msra.gmra.mrb[4].mxu0 %v734_v33 }
 0x400   :  { %2417 = vmatpush1.bf16.msra.mxu0 %v3002_v15  ;;  %970 = vmatprep.mubr.f32.mxu0 %v2919_v0 }
 0x401   :  { %2419 = vmatprep.subr.bf16.mxu0 %v3005_v16 }
 0x404   :  { %2421 = vmatpush1.bf16.msra.mxu0 %v3013_v22 }
 0x405   :  { %2423 = vmatprep.subr.bf16.mxu0 %v3016_v23 }
 0x408   :  { %2425 = vmatpush1.bf16.msra.mxu0 %v3024_v29 }
 0x409   :  { %2427 = vmatprep.subr.bf16.mxu0 %v3027_v30 }
 0x40c   :  { %2429 = vmatpush1.bf16.msra.mxu0 %v3041_v38 }
 0x40d   :  { %2431 = vmatprep.subr.bf16.mxu0 %v3044_v40 }
 0x410   :  { %2433 = vmatpush1.bf16.msra.mxu0 %v3052_v46 }
 0x411   :  { %2435 = vmatprep.subr.bf16.mxu0 %v3055_v47 }
 0x414   :  { %2437 = vmatpush1.bf16.msra.mxu0 %v3065_v53 }
 0x415   :  { %2439 = vmatprep.subr.bf16.mxu0 %v3068_v54 }
 0x418   :  { %2441 = vmatpush1.bf16.msra.mxu0 %v3078_v60 }
 0x419   :  { %2443 = vmatprep.subr.bf16.mxu0 %v3081_v61 }
 0x41c   :  { %2445 = vmatpush1.bf16.msra.mxu0 %v3091_v2 }
 0x41d   :  { %2471 = vmatprep.subr.bf16.mxu0 %v3000_v12 }
 0x4d2   :  { %v807_v43 = vpop.f32.mrb[4].mxu0 }
 0x4d3   :  { %v809_v35 = vpop.f32.mrb[5].mxu0  ;;  %v2698_v36 = vadd.f32 %v807_v43, %v3190_v20 }
 0x4d4   :  { %v2699_v37 = vadd.f32 %v809_v35, %v3169_v1 }
 0x4d5   :  { %v1784_v39 = vmul.f32 -1.442695, %v2698_v36 }
 0x4d6   :  { %v1785_v42 = vmul.f32 -1.442695, %v2699_v37 }
 0x4d8   :  { %2757 = vpow2.f32 %v1785_v42 }
 0x4e2   :  { %v2758_v45 = vpop.eup %2757 }
 0x4e3   :  { %v819_v49 = vadd.f32 1.0, %v2758_v45 }
 0x4e5   :  { %2759 = vrcp.f32 %v819_v49 }
 0x4e6   :  { %2761 = vpow2.f32 %v1784_v39 }
 0x4ef   :  { %v2760_v51 = vpop.eup %2759 }
 0x4f0   :  { %v824_v55 = vmul.f32 %v2760_v51, %v734_v33  ;;  %v2762_v41 = vpop.eup %2761 }
 0x4f1   :  { %v818_v44 = vadd.f32 1.0, %v2762_v41 }
 0x4f2   :  { %2061 = vmatmul.mubr.f32.vlgmr.msra.gmra.mrb[12].mxu1 %v824_v55 }
 0x4f3   :  { %2448 = vmatpush3.bf16.msra.mxu1 %v3117_v5  ;;  %2095 = vmatprep.mubr.msk.f32.mxu1 %vm2921_vm1, %v2919_v0  ;;  %2763 = vrcp.f32 %v818_v44 }
 0x4f4   :  { %2449 = vmatprep.subr.bf16.mxu1 %v2920_v6 }
 0x4f7   :  { %2451 = vmatpush3.bf16.msra.mxu1 %v3122_v9 }
 0x4f8   :  { %2452 = vmatprep.subr.bf16.mxu1 %v2920_v6 }
 0x4fb   :  { %2454 = vmatpush3.bf16.msra.mxu1 %v3126_v13 }
 0x4fc   :  { %2455 = vmatprep.subr.bf16.mxu1 %v2920_v6 }
 0x4fd   :  { %v2764_v3 = vpop.eup %2763 }
 0x4fe   :  { %v896_v4 = vsub.f32 1.0, %v2764_v3 }
 0x4ff   :  { %2457 = vmatpush3.bf16.msra.mxu1 %v3130_v18 }
 0x500   :  { %2458 = vmatprep.subr.bf16.mxu1 %v2920_v6  ;;  %v897_v8 = vmul.f32 %v896_v4, %v734_v33 }
 0x503   :  { %2460 = vmatpush3.bf16.msra.mxu1 %v3134_v21 }
 0x504   :  { %2461 = vmatprep.subr.bf16.mxu1 %v2920_v6 }
 0x507   :  { %2463 = vmatpush3.bf16.msra.mxu1 %v3138_v26 }
 0x508   :  { %2464 = vmatprep.subr.bf16.mxu1 %v2920_v6 }
 0x50b   :  { %2466 = vmatpush3.bf16.msra.mxu1 %v3143_v31 }
 0x50c   :  { %2467 = vmatprep.subr.bf16.mxu1 %v2920_v6 }
 0x50f   :  { %2469 = vmatpush3.bf16.msra.mxu1 %v3147_v34 }
 0x510   :  { %2502 = vmatprep.subr.bf16.mxu1 %v2920_v6 }
 0x5c5   :  { %v891_v57 = vpop.f32.mrb[12].mxu1 }
 0x5c6   :  { %v892_v58 = vadd.f32 %v891_v57, %v3159_v50  ;;  %v2062_v62 = vpop.f32.mrb[13].mxu1 }
 0x5c8   :  { %2765 = vtanh.f32 %v892_v58 }
 0x5d2   :  { %v2766_v7 = vpop.eup %2765 }
 0x5d3   :  { %v898_v10 = vmul.f32 %v2766_v7, %v2764_v3 }
 0x5d5   :  { %v899_v11 = vadd.f32 %v898_v10, %v897_v8 }
 0x5d7   :  { %971 = vmatmul.mubr.f32.vlgmr.msra.gmra.mrb[6].mxu0 %v899_v11 }
 0x5d8   :  { %2473 = vmatpush1.bf16.msra.mxu0 %v3002_v15  ;;  %1135 = vmatprep.mubr.f32.mxu0 %v2919_v0 }
 0x5d9   :  { %2475 = vmatprep.subr.bf16.mxu0 %v3005_v16 }
 0x5dc   :  { %2477 = vmatpush1.bf16.msra.mxu0 %v3013_v22 }
 0x5dd   :  { %2479 = vmatprep.subr.bf16.mxu0 %v3016_v23 }
 0x5e0   :  { %2481 = vmatpush1.bf16.msra.mxu0 %v3024_v29 }
 0x5e1   :  { %2483 = vmatprep.subr.bf16.mxu0 %v3027_v30 }
 0x5e4   :  { %2485 = vmatpush1.bf16.msra.mxu0 %v3041_v38 }
 0x5e5   :  { %2487 = vmatprep.subr.bf16.mxu0 %v3044_v40 }
 0x5e8   :  { %2489 = vmatpush1.bf16.msra.mxu0 %v3052_v46 }
 0x5e9   :  { %2491 = vmatprep.subr.bf16.mxu0 %v3055_v47 }
 0x5ec   :  { %2493 = vmatpush1.bf16.msra.mxu0 %v3065_v53 }
 0x5ed   :  { %2495 = vmatprep.subr.bf16.mxu0 %v3068_v54 }
 0x5f0   :  { %2497 = vmatpush1.bf16.msra.mxu0 %v3078_v60 }
 0x5f1   :  { %2499 = vmatprep.subr.bf16.mxu0 %v3081_v61 }
 0x5f4   :  { %2501 = vmatpush1.bf16.msra.mxu0 %v3091_v2 }
 0x5f5   :  { %2527 = vmatprep.subr.bf16.mxu0 %v3000_v12 }
 0x6aa   :  { %v972_v50 = vpop.f32.mrb[6].mxu0 }
 0x6ab   :  { %v974_v14 = vpop.f32.mrb[7].mxu0  ;;  %v2700_v32 = vadd.f32 %v972_v50, %v3190_v20 }
 0x6ac   :  { %v2701_v17 = vadd.f32 %v974_v14, %v3169_v1 }
 0x6ad   :  { %v1786_v33 = vmul.f32 -1.442695, %v2700_v32 }
 0x6ae   :  { %v1787_v19 = vmul.f32 -1.442695, %v2701_v17 }
 0x6b0   :  { %2767 = vpow2.f32 %v1787_v19 }
 0x6ba   :  { %v2768_v24 = vpop.eup %2767 }
 0x6bb   :  { %v984_v25 = vadd.f32 1.0, %v2768_v24 }
 0x6bd   :  { %2769 = vrcp.f32 %v984_v25 }
 0x6be   :  { %2771 = vpow2.f32 %v1786_v33 }
 0x6c7   :  { %v2770_v27 = vpop.eup %2769 }
 0x6c8   :  { %v989_v28 = vmul.f32 %v2770_v27, %v899_v11  ;;  %v2772_v43 = vpop.eup %2771 }
 0x6c9   :  { %v983_v35 = vadd.f32 1.0, %v2772_v43 }
 0x6ca   :  { %2096 = vmatmul.mubr.f32.vlgmr.msra.gmra.mrb[14].mxu1 %v989_v28 }
 0x6cb   :  { %2504 = vmatpush3.bf16.msra.mxu1 %v3117_v5  ;;  %2130 = vmatprep.mubr.msk.f32.mxu1 %vm2921_vm1, %v2919_v0  ;;  %2773 = vrcp.f32 %v983_v35 }
 0x6cc   :  { %2505 = vmatprep.subr.bf16.mxu1 %v2920_v6 }
 0x6cf   :  { %2507 = vmatpush3.bf16.msra.mxu1 %v3122_v9 }
 0x6d0   :  { %2508 = vmatprep.subr.bf16.mxu1 %v2920_v6 }
 0x6d3   :  { %2510 = vmatpush3.bf16.msra.mxu1 %v3126_v13 }
 0x6d4   :  { %2511 = vmatprep.subr.bf16.mxu1 %v2920_v6 }
 0x6d5   :  { %v2774_v49 = vpop.eup %2773 }
 0x6d6   :  { %v1061_v51 = vsub.f32 1.0, %v2774_v49 }
 0x6d7   :  { %2513 = vmatpush3.bf16.msra.mxu1 %v3130_v18 }
 0x6d8   :  { %2514 = vmatprep.subr.bf16.mxu1 %v2920_v6  ;;  %v1062_v36 = vmul.f32 %v1061_v51, %v899_v11 }
 0x6db   :  { %2516 = vmatpush3.bf16.msra.mxu1 %v3134_v21 }
 0x6dc   :  { %2517 = vmatprep.subr.bf16.mxu1 %v2920_v6 }
 0x6df   :  { %2519 = vmatpush3.bf16.msra.mxu1 %v3138_v26 }
 0x6e0   :  { %2520 = vmatprep.subr.bf16.mxu1 %v2920_v6 }
 0x6e3   :  { %2522 = vmatpush3.bf16.msra.mxu1 %v3143_v31 }
 0x6e4   :  { %2523 = vmatprep.subr.bf16.mxu1 %v2920_v6 }
 0x6e7   :  { %2525 = vmatpush3.bf16.msra.mxu1 %v3147_v34 }
 0x6e8   :  { %2558 = vmatprep.subr.bf16.mxu1 %v2920_v6 }
 0x79d   :  { %v1056_v37 = vpop.f32.mrb[14].mxu1 }
 0x79e   :  { %v1057_v42 = vadd.f32 %v1056_v37, %v3157_v48  ;;  %v2097_v45 = vpop.f32.mrb[15].mxu1 }
 0x7a0   :  { %2775 = vtanh.f32 %v1057_v42 }
 0x7aa   :  { %v2776_v55 = vpop.eup %2775 }
 0x7ab   :  { %v1063_v39 = vmul.f32 %v2776_v55, %v2774_v49 }
 0x7ad   :  { %v1064_v41 = vadd.f32 %v1063_v39, %v1062_v36 }
 0x7af   :  { %1136 = vmatmul.mubr.f32.vlgmr.msra.gmra.mrb[8].mxu0 %v1064_v41 }
 0x7b0   :  { %2529 = vmatpush1.bf16.msra.mxu0 %v3002_v15  ;;  %1300 = vmatprep.mubr.f32.mxu0 %v2919_v0 }
 0x7b1   :  { %2531 = vmatprep.subr.bf16.mxu0 %v3005_v16 }
 0x7b4   :  { %2533 = vmatpush1.bf16.msra.mxu0 %v3013_v22 }
 0x7b5   :  { %2535 = vmatprep.subr.bf16.mxu0 %v3016_v23 }
 0x7b8   :  { %2537 = vmatpush1.bf16.msra.mxu0 %v3024_v29 }
 0x7b9   :  { %2539 = vmatprep.subr.bf16.mxu0 %v3027_v30 }
 0x7bc   :  { %2541 = vmatpush1.bf16.msra.mxu0 %v3041_v38 }
 0x7bd   :  { %2543 = vmatprep.subr.bf16.mxu0 %v3044_v40 }
 0x7c0   :  { %2545 = vmatpush1.bf16.msra.mxu0 %v3052_v46 }
 0x7c1   :  { %2547 = vmatprep.subr.bf16.mxu0 %v3055_v47 }
 0x7c4   :  { %2549 = vmatpush1.bf16.msra.mxu0 %v3065_v53 }
 0x7c5   :  { %2551 = vmatprep.subr.bf16.mxu0 %v3068_v54 }
 0x7c8   :  { %2553 = vmatpush1.bf16.msra.mxu0 %v3078_v60 }
 0x7c9   :  { %2555 = vmatprep.subr.bf16.mxu0 %v3081_v61 }
 0x7cc   :  { %2557 = vmatpush1.bf16.msra.mxu0 %v3091_v2 }
 0x7cd   :  { %2583 = vmatprep.subr.bf16.mxu0 %v3000_v12 }
 0x882   :  { %v1137_v48 = vpop.f32.mrb[8].mxu0 }
 0x883   :  { %v1139_v44 = vpop.f32.mrb[9].mxu0  ;;  %v2702_v8 = vadd.f32 %v1137_v48, %v3190_v20 }
 0x884   :  { %v2703_v57 = vadd.f32 %v1139_v44, %v3169_v1 }
 0x885   :  { %v1788_v10 = vmul.f32 -1.442695, %v2702_v8 }
 0x886   :  { %v1789_v58 = vmul.f32 -1.442695, %v2703_v57 }
 0x888   :  { %2777 = vpow2.f32 %v1789_v58 }
 0x892   :  { %v2778_v62 = vpop.eup %2777 }
 0x893   :  { %v1149_v3 = vadd.f32 1.0, %v2778_v62 }
 0x895   :  { %2779 = vrcp.f32 %v1149_v3 }
 0x896   :  { %2781 = vpow2.f32 %v1788_v10 }
 0x89f   :  { %v2780_v4 = vpop.eup %2779 }
 0x8a0   :  { %v1154_v7 = vmul.f32 %v2780_v4, %v1064_v41  ;;  %v2782_v11 = vpop.eup %2781 }
 0x8a1   :  { %v1148_v50 = vadd.f32 1.0, %v2782_v11 }
 0x8a2   :  { %2131 = vmatmul.mubr.f32.vlgmr.msra.gmra.mrb[16].mxu1 %v1154_v7 }
 0x8a3   :  { %2560 = vmatpush3.bf16.msra.mxu1 %v3117_v5  ;;  %2165 = vmatprep.mubr.msk.f32.mxu1 %vm2921_vm1, %v2919_v0  ;;  %2783 = vrcp.f32 %v1148_v50 }
 0x8a4   :  { %2561 = vmatprep.subr.bf16.mxu1 %v2920_v6 }
 0x8a7   :  { %2563 = vmatpush3.bf16.msra.mxu1 %v3122_v9 }
 0x8a8   :  { %2564 = vmatprep.subr.bf16.mxu1 %v2920_v6 }
 0x8ab   :  { %2566 = vmatpush3.bf16.msra.mxu1 %v3126_v13 }
 0x8ac   :  { %2567 = vmatprep.subr.bf16.mxu1 %v2920_v6 }
 0x8ad   :  { %v2784_v24 = vpop.eup %2783 }
 0x8ae   :  { %v1226_v25 = vsub.f32 1.0, %v2784_v24 }
 0x8af   :  { %2569 = vmatpush3.bf16.msra.mxu1 %v3130_v18 }
 0x8b0   :  { %2570 = vmatprep.subr.bf16.mxu1 %v2920_v6  ;;  %v1227_v28 = vmul.f32 %v1226_v25, %v1064_v41 }
 0x8b3   :  { %2572 = vmatpush3.bf16.msra.mxu1 %v3134_v21 }
 0x8b4   :  { %2573 = vmatprep.subr.bf16.mxu1 %v2920_v6 }
 0x8b7   :  { %2575 = vmatpush3.bf16.msra.mxu1 %v3138_v26 }
 0x8b8   :  { %2576 = vmatprep.subr.bf16.mxu1 %v2920_v6 }
 0x8bb   :  { %2578 = vmatpush3.bf16.msra.mxu1 %v3143_v31 }
 0x8bc   :  { %2579 = vmatprep.subr.bf16.mxu1 %v2920_v6 }
 0x8bf   :  { %2581 = vmatpush3.bf16.msra.mxu1 %v3147_v34 }
 0x8c0   :  { %2614 = vmatprep.subr.bf16.mxu1 %v2920_v6 }
 0x975   :  { %v1221_v14 = vpop.f32.mrb[16].mxu1 }
 0x976   :  { %v1222_v17 = vadd.f32 %v1221_v14, %v3163_v56  ;;  %v2132_v19 = vpop.f32.mrb[17].mxu1 }
 0x978   :  { %2785 = vtanh.f32 %v1222_v17 }
 0x982   :  { %v2786_v27 = vpop.eup %2785 }
 0x983   :  { %v1228_v32 = vmul.f32 %v2786_v27, %v2784_v24 }
 0x985   :  { %v1229_v33 = vadd.f32 %v1228_v32, %v1227_v28 }
 0x987   :  { %1301 = vmatmul.mubr.f32.vlgmr.msra.gmra.mrb[10].mxu0 %v1229_v33 }
 0x988   :  { %2585 = vmatpush1.bf16.msra.mxu0 %v3002_v15  ;;  %1465 = vmatprep.mubr.f32.mxu0 %v2919_v0 }
 0x989   :  { %2587 = vmatprep.subr.bf16.mxu0 %v3005_v16 }
 0x98c   :  { %2589 = vmatpush1.bf16.msra.mxu0 %v3013_v22 }
 0x98d   :  { %2591 = vmatprep.subr.bf16.mxu0 %v3016_v23 }
 0x990   :  { %2593 = vmatpush1.bf16.msra.mxu0 %v3024_v29 }
 0x991   :  { %2595 = vmatprep.subr.bf16.mxu0 %v3027_v30 }
 0x994   :  { %2597 = vmatpush1.bf16.msra.mxu0 %v3041_v38 }
 0x995   :  { %2599 = vmatprep.subr.bf16.mxu0 %v3044_v40 }
 0x998   :  { %2601 = vmatpush1.bf16.msra.mxu0 %v3052_v46 }
 0x999   :  { %2603 = vmatprep.subr.bf16.mxu0 %v3055_v47 }
 0x99c   :  { %2605 = vmatpush1.bf16.msra.mxu0 %v3065_v53 }
 0x99d   :  { %2607 = vmatprep.subr.bf16.mxu0 %v3068_v54 }
 0x9a0   :  { %2609 = vmatpush1.bf16.msra.mxu0 %v3078_v60 }
 0x9a1   :  { %2611 = vmatprep.subr.bf16.mxu0 %v3081_v61 }
 0x9a4   :  { %2613 = vmatpush1.bf16.msra.mxu0 %v3091_v2 }
 0x9a5   :  { %2639 = vmatprep.subr.bf16.mxu0 %v3000_v12 }
 0xa5a   :  { %v1302_v56 = vpop.f32.mrb[10].mxu0 }
 0xa5b   :  { %v1304_v43 = vpop.f32.mrb[11].mxu0  ;;  %v2704_v12 = vadd.f32 %v1302_v56, %v3190_v20 }
 0xa5c   :  { %v2705_v35 = vadd.f32 %v1304_v43, %v3169_v1 }
 0xa5d   :  { %v1790_v55 = vmul.f32 -1.442695, %v2704_v12 }
 0xa5e   :  { %v1791_v37 = vmul.f32 -1.442695, %v2705_v35 }
 0xa60   :  { %2787 = vpow2.f32 %v1791_v37 }
 0xa6a   :  { %v2788_v42 = vpop.eup %2787 }
 0xa6b   :  { %v1314_v45 = vadd.f32 1.0, %v2788_v42 }
 0xa6d   :  { %2789 = vrcp.f32 %v1314_v45 }
 0xa6e   :  { %2791 = vpow2.f32 %v1790_v55 }
 0xa77   :  { %v2790_v49 = vpop.eup %2789 }
 0xa78   :  { %v1319_v51 = vmul.f32 %v2790_v49, %v1229_v33  ;;  %v2792_v36 = vpop.eup %2791 }
 0xa79   :  { %v1313_v39 = vadd.f32 1.0, %v2792_v36 }
 0xa7a   :  { %2166 = vmatmul.mubr.f32.vlgmr.msra.gmra.mrb[18].mxu1 %v1319_v51 }
 0xa7b   :  { %2616 = vmatpush3.bf16.msra.mxu1 %v3117_v5  ;;  %2200 = vmatprep.mubr.msk.f32.mxu1 %vm2921_vm1, %v2919_v0  ;;  %2793 = vrcp.f32 %v1313_v39 }
 0xa7c   :  { %2617 = vmatprep.subr.bf16.mxu1 %v2920_v6 }
 0xa7f   :  { %2619 = vmatpush3.bf16.msra.mxu1 %v3122_v9 }
 0xa80   :  { %2620 = vmatprep.subr.bf16.mxu1 %v2920_v6 }
 0xa83   :  { %2622 = vmatpush3.bf16.msra.mxu1 %v3126_v13 }
 0xa84   :  { %2623 = vmatprep.subr.bf16.mxu1 %v2920_v6 }
 0xa85   :  { %v2794_v57 = vpop.eup %2793 }
 0xa86   :  { %v1391_v58 = vsub.f32 1.0, %v2794_v57 }
 0xa87   :  { %2625 = vmatpush3.bf16.msra.mxu1 %v3130_v18 }
 0xa88   :  { %2626 = vmatprep.subr.bf16.mxu1 %v2920_v6  ;;  %v1392_v3 = vmul.f32 %v1391_v58, %v1229_v33 }
 0xa8b   :  { %2628 = vmatpush3.bf16.msra.mxu1 %v3134_v21 }
 0xa8c   :  { %2629 = vmatprep.subr.bf16.mxu1 %v2920_v6 }
 0xa8f   :  { %2631 = vmatpush3.bf16.msra.mxu1 %v3138_v26 }
 0xa90   :  { %2632 = vmatprep.subr.bf16.mxu1 %v2920_v6 }
 0xa93   :  { %2634 = vmatpush3.bf16.msra.mxu1 %v3143_v31 }
 0xa94   :  { %2635 = vmatprep.subr.bf16.mxu1 %v2920_v6 }
 0xa97   :  { %2637 = vmatpush3.bf16.msra.mxu1 %v3147_v34 }
 0xa98   :  { %2670 = vmatprep.subr.bf16.mxu1 %v2920_v6 }
 0xb4d   :  { %v1386_v41 = vpop.f32.mrb[18].mxu1 }
 0xb4e   :  { %v1387_v48 = vadd.f32 %v1386_v41, %v3161_v52  ;;  %v2167_v44 = vpop.f32.mrb[19].mxu1 }
 0xb50   :  { %2795 = vtanh.f32 %v1387_v48 }
 0xb5a   :  { %v2796_v62 = vpop.eup %2795 }
 0xb5b   :  { %v1393_v4 = vmul.f32 %v2796_v62, %v2794_v57 }
 0xb5d   :  { %v1394_v7 = vadd.f32 %v1393_v4, %v1392_v3 }
 0xb5f   :  { %1466 = vmatmul.mubr.f32.vlgmr.msra.gmra.mrb[12].mxu0 %v1394_v7 }
 0xb60   :  { %2641 = vmatpush1.bf16.msra.mxu0 %v3002_v15  ;;  %1630 = vmatprep.mubr.f32.mxu0 %v2919_v0 }
 0xb61   :  { %2643 = vmatprep.subr.bf16.mxu0 %v3005_v16 }
 0xb64   :  { %2645 = vmatpush1.bf16.msra.mxu0 %v3013_v22 }
 0xb65   :  { %2647 = vmatprep.subr.bf16.mxu0 %v3016_v23 }
 0xb68   :  { %2649 = vmatpush1.bf16.msra.mxu0 %v3024_v29 }
 0xb69   :  { %2651 = vmatprep.subr.bf16.mxu0 %v3027_v30 }
 0xb6c   :  { %2653 = vmatpush1.bf16.msra.mxu0 %v3041_v38 }
 0xb6d   :  { %2655 = vmatprep.subr.bf16.mxu0 %v3044_v40 }
 0xb70   :  { %2657 = vmatpush1.bf16.msra.mxu0 %v3052_v46 }
 0xb71   :  { %2659 = vmatprep.subr.bf16.mxu0 %v3055_v47 }
 0xb74   :  { %2661 = vmatpush1.bf16.msra.mxu0 %v3065_v53 }
 0xb75   :  { %2663 = vmatprep.subr.bf16.mxu0 %v3068_v54 }
 0xb78   :  { %2665 = vmatpush1.bf16.msra.mxu0 %v3078_v60 }
 0xb79   :  { %2667 = vmatprep.subr.bf16.mxu0 %v3081_v61 }
 0xb7c   :  { %2669 = vmatpush1.bf16.msra.mxu0 %v3091_v2 }
 0xc32   :  { %v1467_v15 = vpop.f32.mrb[12].mxu0 }
 0xc33   :  { %v1469_v16 = vpop.f32.mrb[13].mxu0 }
 0xc34   :  { %v2707_v22 = vadd.f32 %v1469_v16, %v3169_v1 }
 0xc36   :  { %v1793_v23 = vmul.f32 -1.442695, %v2707_v22 }
 0xc38   :  { %2797 = vpow2.f32 %v1793_v23 }
 0xc42   :  { %v2798_v29 = vpop.eup %2797 }
 0xc43   :  { %v1479_v30 = vadd.f32 1.0, %v2798_v29 }
 0xc45   :  { %2799 = vrcp.f32 %v1479_v30 }
 0xc4f   :  { %v2800_v38 = vpop.eup %2799 }
 0xc50   :  { %v1484_v40 = vmul.f32 %v2800_v38, %v1394_v7 }
 0xc52   :  { %2201 = vmatmul.mubr.f32.vlgmr.msra.gmra.mrb[20].mxu1 %v1484_v40 }
 0xc53   :  { %2672 = vmatpush3.bf16.msra.mxu1 %v3117_v5  ;;  %2235 = vmatprep.mubr.msk.f32.mxu1 %vm2921_vm1, %v2919_v0  ;;  %v2706_v0 = vadd.f32 %v1467_v15, %v3190_v20 }
 0xc54   :  { %2673 = vmatprep.subr.bf16.mxu1 %v2920_v6 }
 0xc55   :  { %v1792_v46 = vmul.f32 -1.442695, %v2706_v0 }
 0xc57   :  { %2675 = vmatpush3.bf16.msra.mxu1 %v3122_v9  ;;  %2801 = vpow2.f32 %v1792_v46 }
 0xc58   :  { %2676 = vmatprep.subr.bf16.mxu1 %v2920_v6 }
 0xc5b   :  { %2678 = vmatpush3.bf16.msra.mxu1 %v3126_v13 }
 0xc5c   :  { %2679 = vmatprep.subr.bf16.mxu1 %v2920_v6 }
 0xc5f   :  { %2681 = vmatpush3.bf16.msra.mxu1 %v3130_v18 }
 0xc60   :  { %2682 = vmatprep.subr.bf16.mxu1 %v2920_v6 }
 0xc61   :  { %v2802_v47 = vpop.eup %2801 }
 0xc62   :  { %v1478_v53 = vadd.f32 1.0, %v2802_v47 }
 0xc63   :  { %2684 = vmatpush3.bf16.msra.mxu1 %v3134_v21 }
 0xc64   :  { %2685 = vmatprep.subr.bf16.mxu1 %v2920_v6  ;;  %2803 = vrcp.f32 %v1478_v53 }
 0xc67   :  { %2687 = vmatpush3.bf16.msra.mxu1 %v3138_v26 }
 0xc68   :  { %2688 = vmatprep.subr.bf16.mxu1 %v2920_v6 }
 0xc6b   :  { %2690 = vmatpush3.bf16.msra.mxu1 %v3143_v31 }
 0xc6c   :  { %2691 = vmatprep.subr.bf16.mxu1 %v2920_v6 }
 0xc6e   :  { %v2804_v2 = vpop.eup %2803 }
 0xc6f   :  { %2693 = vmatpush3.bf16.msra.mxu1 %v3147_v34  ;;  %v1556_v5 = vsub.f32 1.0, %v2804_v2 }
 0xc71   :  { %v1557_v13 = vmul.f32 %v1556_v5, %v1394_v7 }
 0xd25   :  { %v1551_v54 = vpop.f32.mrb[20].mxu1 }
 0xd26   :  { %v1552_v60 = vadd.f32 %v1551_v54, %v3167_v63  ;;  %v2202_v61 = vpop.f32.mrb[21].mxu1 }
 0xd28   :  { %2805 = vtanh.f32 %v1552_v60 }
 0xd32   :  { %v2806_v9 = vpop.eup %2805 }
 0xd33   :  { %v1558_v18 = vmul.f32 %v2806_v9, %v2804_v2 }
 0xd35   :  { %v1559_v6 = vadd.f32 %v1558_v18, %v1557_v13 }
 0xd37   :  { %1631 = vmatmul.mubr.f32.vlgmr.msra.gmra.mrb[14].mxu0 %v1559_v6 }
 0xe0a   :  { %v1632_v21 = vpop.f32.mrb[14].mxu0 }
 0xe0b   :  { %v1634_v26 = vpop.f32.mrb[15].mxu0  ;;  %v2708_v11 = vadd.f32 %v1632_v21, %v3190_v20 }
 0xe0c   :  { %v2709_v31 = vadd.f32 %v1634_v26, %v3169_v1 }
 0xe0d   :  { %v1794_v50 = vmul.f32 -1.442695, %v2708_v11 }
 0xe0e   :  { %v1795_v34 = vmul.f32 -1.442695, %v2709_v31 }
 0xe10   :  { %2807 = vpow2.f32 %v1795_v34 }
 0xe1a   :  { %v2808_v52 = vpop.eup %2807 }
 0xe1b   :  { %v1644_v8 = vadd.f32 1.0, %v2808_v52 }
 0xe1d   :  { %2809 = vrcp.f32 %v1644_v8 }
 0xe1e   :  { %2811 = vpow2.f32 %v1794_v50 }
 0xe27   :  { %v2810_v10 = vpop.eup %2809 }
 0xe28   :  { %v1649_v63 = vmul.f32 %v2810_v10, %v1559_v6  ;;  %v2812_v14 = vpop.eup %2811 }
 0xe29   :  { %v1643_v17 = vadd.f32 1.0, %v2812_v14 }
 0xe2a   :  { %2236 = vmatmul.mubr.f32.vlgmr.msra.gmra.mrb[22].mxu1 %v1649_v63 }
 0xe2b   :  { %2813 = vrcp.f32 %v1643_v17 }
 0xe35   :  { %v2814_v1 = vpop.eup %2813 }
 0xe36   :  { %v1721_v27 = vsub.f32 1.0, %v2814_v1 }
 0xe38   :  { %v1722_v20 = vmul.f32 %v1721_v27, %v1559_v6 }
 0xefd   :  { %v1716_v19 = vpop.f32.mrb[22].mxu1 }
 0xefe   :  { %v1717_v24 = vadd.f32 %v1716_v19, %v3165_v59  ;;  %v2237_v25 = vpop.f32.mrb[23].mxu1 }
 0xf00   :  { %2815 = vtanh.f32 %v1717_v24 }
 0xf0a   :  { %v2816_v28 = vpop.eup %2815 }
 0xf0b   :  { %1726 = vst [vmem:[#allocation9] sm:$0xff] %v2816_v28  ;;  %v1723_v32 = vmul.f32 %v2816_v28, %v2814_v1 }
 0xf0c   :  { %2872 = shalt.err (!%p2869_p6)
}
 0xf0d   :  { %s2873_s7 = scalar_lea.hbm %s3452_s6, 128 }
 0xf0e   :  { %p2874_p7 = scmp.ne.s32.totalorder %s3452_s6, %s2873_s7  ;;  %p2877_p8 = scmp.lt.u32.totalorder %s2873_s7, %s3452_s6 }
 0xf10   :  { %p2879_p9 = pnand %p2877_p8, %p2874_p7 }
 0xf12   :  { %2882 = shalt.err (!%p2879_p9)
}
 0xf13   :  { %1746 = dma.vmem_to_hbm [thread:$0]  %s1744_s26, 128, %s3452_s6, [#allocation10]   ;;  %v1724_v59 = vadd.f32 %v1723_v32, %v1722_v20 }
 0xf14   :  { %s2883_s14 = scalar_lea.vmem %s1734_s28, 128  ;;  %p2888_p11 = scmp.lt.s32.totalorder %s1734_s28, %s1734_s28 }
 0xf15   :  { %1725 = vst [vmem:[#allocation8] sm:$0xff] %v1724_v59  ;;  %p2884_p10 = scmp.ne.s32.totalorder %s1734_s28, %s2883_s14  ;;  %p2889_p12 = scmp.lt.s32.totalorder %s2883_s14, %s2883_s14 }
 0xf17   :  { %p2890_p13 = por %p2889_p12, %p2888_p11 }
 0xf19   :  { %p2891_p0 = pnand %p2890_p13, %p2884_p10 }
 0xf1b   :  { %2894 = shalt.err (!%p2891_p0)
}
 0xf1c   :  { %s2895_s17 = scalar_lea.hbm %s3451_s5, 128 }
 0xf1d   :  { %p2896_p1 = scmp.ne.s32.totalorder %s3451_s5, %s2895_s17  ;;  %p2899_p2 = scmp.lt.u32.totalorder %s2895_s17, %s3451_s5 }
 0xf1f   :  { %p2901_p3 = pnand %p2899_p2, %p2896_p1 }
 0xf21   :  { %2904 = shalt.err (!%p2901_p3)
}
 0xf22   :  { %1736 = dma.vmem_to_hbm [thread:$0]  %s1734_s28, 128, %s3451_s5, [#allocation5]  }
 0xf23   :  { %2909 = dma.done.wait [#allocation5], 128  }
 0xf24   :  { %2910 = vsyncadd [#allocation5], 4294967168 }
 0xf25   :  { %2911 = dma.done.wait [#allocation10], 128  }
 0xf26   :  { %2912 = vsyncadd [#allocation10], 4294967168 }
 0xf27   :  { %1753 = vsyncpa [#allocation4], 1 }
 0xf28   :  { %1754 = vsyncpa [#allocation7], 1 }
 0xf29   :  { %1755 = vsyncpa [#allocation5], 1 }
 0xf2a   :  { %1756 = vsyncpa [#allocation10], 1 }

</bundles_post_ra>
